<compile_context>
chip_gen: v6e
topology: v6e:2x2x1
jax: 0.10.0
libtpu: 0.0.40
codegen_flags: <defaults>
</compile_context>

<pallas_src>
import functools

import jax
import jax.numpy as jnp
from jax import lax
from jax.experimental import pallas as pl
from jax.experimental.pallas import tpu as pltpu


def _round_up(x, m):
    return ((x + m - 1) // m) * m


def lstm_block_kernel(xp_ref, whh_ref, hout_ref, h_ref, c_ref, *, seq_len, block_t):
    """Processes `block_t` LSTM timesteps per grid step; grid axis 0 runs over time blocks.

    xp_ref:   (T, Bp, 4*Hp) f32   precomputed x_t @ W_ih^T + b for the timesteps of this block
    whh_ref:  (Hp, 4*Hp)    bf16  recurrent weight W_hh^T (per-gate zero-padded), constant
    hout_ref: (Bp, Hp)      bf16  final hidden state (written on the last grid step only)
    h_ref:    (Bp, Hp)      bf16  recurrent hidden state, VMEM scratch (persists over grid)
    c_ref:    (Bp, Hp)      f32   cell state, VMEM scratch (persists over grid)
    """
    blk = pl.program_id(0)
    nblk = pl.num_programs(0)
    Hp = c_ref.shape[1]
    needs_mask = (seq_len % block_t) != 0  # static

    @pl.when(blk == 0)
    def _init():
        h_ref[...] = jnp.zeros_like(h_ref)
        c_ref[...] = jnp.zeros_like(c_ref)

    def step(s, carry):
        h, c = carry  # h: (Bp, Hp) bf16, c: (Bp, Hp) f32
        # Single small serial MXU matmul per step (K = Hp only; x contribution precomputed).
        gates = xp_ref[s] + jnp.dot(h, whh_ref[...], preferred_element_type=jnp.float32)

        # Hp is a multiple of 128 -> every gate slice is lane-aligned.
        i_g = jax.nn.sigmoid(gates[:, 0 * Hp:1 * Hp])
        f_g = jax.nn.sigmoid(gates[:, 1 * Hp:2 * Hp])
        g_g = jnp.tanh(gates[:, 2 * Hp:3 * Hp])
        o_g = jax.nn.sigmoid(gates[:, 3 * Hp:4 * Hp])

        c_new = f_g * c + i_g * g_g
        h_new = (o_g * jnp.tanh(c_new)).astype(jnp.bfloat16)

        if needs_mask:  # only traced when S is not a multiple of T
            valid = (blk * block_t + s) < seq_len
            h_new = jnp.where(valid, h_new, h)
            c_new = jnp.where(valid, c_new, c)
        return h_new, c_new

    h, c = lax.fori_loop(0, block_t, step, (h_ref[...], c_ref[...]), unroll=True)
    h_ref[...] = h
    c_ref[...] = c

    @pl.when(blk == nblk - 1)
    def _final():
        hout_ref[...] = h


def init_params(key, embedding_size, hidden_size, num_labels):
    """Deterministic init matching PyTorch shapes (uniform(-1/sqrt(H), 1/sqrt(H)))."""
    ks = jax.random.split(key, 6)
    bound = 1.0 / (hidden_size ** 0.5)
    H4 = 4 * hidden_size
    return {
        "w_ih": jax.random.uniform(ks[0], (H4, embedding_size), jnp.float32, -bound, bound),
        "w_hh": jax.random.uniform(ks[1], (H4, hidden_size), jnp.float32, -bound, bound),
        "b_ih": jax.random.uniform(ks[2], (H4,), jnp.float32, -bound, bound),
        "b_hh": jax.random.uniform(ks[3], (H4,), jnp.float32, -bound, bound),
        "w_lin": jax.random.uniform(ks[4], (num_labels, hidden_size), jnp.float32, -bound, bound),
        "b_lin": jax.random.uniform(ks[5], (num_labels,), jnp.float32, -bound, bound),
    }


def prepare_kernel_params(raw, embedding_size, hidden_size, num_labels):
    """Transpose / pad weights. Gate blocks of the 4H axis are padded independently with zeros
    (and bias padded lanes are zero), so padded hidden/cell lanes stay exactly zero through the
    recurrence and results on the real slice are unaffected by padding."""
    del embedding_size, num_labels  # shapes come from the arrays
    H = hidden_size
    Hp = _round_up(H, 128)

    def pad_gates_out_t(w):  # (4H, in_dim) -> (in_dim, 4*Hp), per-gate zero cols on output axis
        in_dim = w.shape[1]
        w = w.reshape(4, H, in_dim)
        w = jnp.pad(w, ((0, 0), (0, Hp - H), (0, 0)))
        return w.reshape(4 * Hp, in_dim).T

    w_ih_t = pad_gates_out_t(raw["w_ih"]).astype(jnp.bfloat16)                      # (E, 4Hp)
    w_hh_t = pad_gates_out_t(raw["w_hh"])                                           # (H, 4Hp)
    w_hh_t = jnp.pad(w_hh_t, ((0, Hp - H), (0, 0))).astype(jnp.bfloat16)            # (Hp, 4Hp)

    b = (raw["b_ih"] + raw["b_hh"]).reshape(4, H)
    b = jnp.pad(b, ((0, 0), (0, Hp - H))).reshape(1, 4 * Hp).astype(jnp.float32)    # (1, 4Hp)

    w_lin_t = raw["w_lin"].T.astype(jnp.bfloat16)                                    # (H, L)
    b_lin = raw["b_lin"].astype(jnp.float32)                                         # (L,)

    return {"w_ih_t": w_ih_t, "w_hh_t": w_hh_t, "b": b, "w_lin_t": w_lin_t, "b_lin": b_lin}


def _kernel_vmem_bytes(block_t, Bp, Hp):
    """Size the scoped VMEM limit from actual buffers (with headroom); cap under v7x's 64 MiB."""
    xp_block = block_t * Bp * 4 * Hp * 4 * 2   # f32 x-projection block, double-buffered
    w_hh = Hp * 4 * Hp * 2 * 2                 # bf16 recurrent weight, double-buffered
    h_out = Bp * Hp * 2 * 2                    # bf16 output, double-buffered
    scratch = Bp * Hp * (2 + 4)                # h bf16 + c f32
    gate_work = Bp * 4 * Hp * 4 * 3            # gates + nonlinearity temporaries
    total = xp_block + w_hh + h_out + scratch + gate_work
    return int(min(max(int(total * 1.5), 4 * 1024 * 1024), 48 * 1024 * 1024))


@jax.jit
def lstm_forward(inputs_bse, kp):
    """inputs_bse: (B, S, E) batch-first, matching the PyTorch module. Returns (B, num_labels)."""
    B, S, E = inputs_bse.shape
    Hp = kp["w_hh_t"].shape[0]
    H = kp["w_lin_t"].shape[0]
    Bp = max(16, _round_up(B, 16))           # bf16 sublane tile
    T = max(1, min(8, S))                    # timesteps per grid step
    Sp = _round_up(S, T)
    n_blocks = Sp // T

    # ---- Hoisted input projection: one large batched MXU matmul (runs in XLA) ----
    x2 = inputs_bse.reshape(B * S, E).astype(jnp.bfloat16)
    xp = jnp.dot(x2, kp["w_ih_t"], preferred_element_type=jnp.float32) + kp["b"]   # (B*S, 4Hp)
    xp = jnp.transpose(xp.reshape(B, S, 4 * Hp), (1, 0, 2))                         # (S, B, 4Hp)
    xp = jnp.pad(xp, ((0, Sp - S), (0, Bp - B), (0, 0)))                             # (Sp, Bp, 4Hp)

    # ---- Serial recurrence in Pallas ----
    h_final = pl.pallas_call(
        functools.partial(lstm_block_kernel, seq_len=S, block_t=T),
        out_shape=jax.ShapeDtypeStruct((Bp, Hp), jnp.bfloat16),
        grid=(n_blocks,),
        in_specs=[
            pl.BlockSpec((T, Bp, 4 * Hp), lambda b: (b, 0, 0)),   # x_proj block: streamed
            pl.BlockSpec((Hp, 4 * Hp), lambda b: (0, 0)),         # W_hh^T: constant, resident
        ],
        out_specs=pl.BlockSpec((Bp, Hp), lambda b: (0, 0)),
        scratch_shapes=[
            pltpu.VMEM((Bp, Hp), jnp.bfloat16),   # h (bf16: MXU operand only)
            pltpu.VMEM((Bp, Hp), jnp.float32),    # c
        ],
        compiler_params=pltpu.CompilerParams(
            dimension_semantics=("arbitrary",),   # sequential recurrence over time blocks
            vmem_limit_bytes=_kernel_vmem_bytes(T, Bp, Hp),
        ),
    )(xp, kp["w_hh_t"])

    # ---- Classifier head in plain XLA (tiny; keeps wlin/blin out of the recurrence's VMEM) ----
    h = h_final[:B, :H]                                            # padded lanes are exactly 0
    logits = jnp.dot(h, kp["w_lin_t"], preferred_element_type=jnp.float32) + kp["b_lin"][None, :]
    return logits


def reference_forward(inputs_bse, raw, hidden_size, matmul_dtype=jnp.float32):
    """Pure-JAX reference of the same forward (PyTorch semantics). matmul_dtype=bfloat16 mimics
    the kernel's bf16 MXU operands (f32 accumulation, f32 elementwise)."""
    B, S, E = inputs_bse.shape
    H = hidden_size
    wih_t = raw["w_ih"].T.astype(matmul_dtype)   # (E, 4H)
    whh_t = raw["w_hh"].T.astype(matmul_dtype)   # (H, 4H)
    b = (raw["b_ih"] + raw["b_hh"])[None, :]
    wlin_t = raw["w_lin"].T.astype(matmul_dtype)
    blin = raw["b_lin"][None, :]

    def step(carry, x_t):
        h, c = carry
        gates = (
            jnp.dot(x_t.astype(matmul_dtype), wih_t, preferred_element_type=jnp.float32)
            + jnp.dot(h.astype(matmul_dtype), whh_t, preferred_element_type=jnp.float32)
            + b
        )
        i = jax.nn.sigmoid(gates[:, 0:H])
        f = jax.nn.sigmoid(gates[:, H:2 * H])
        g = jnp.tanh(gates[:, 2 * H:3 * H])
        o = jax.nn.sigmoid(gates[:, 3 * H:4 * H])
        c = f * c + i * g
        h = o * jnp.tanh(c)
        return (h, c), None

    x_sbe = jnp.transpose(inputs_bse, (1, 0, 2))
    (h, _), _ = lax.scan(
        step, (jnp.zeros((B, H), jnp.float32), jnp.zeros((B, H), jnp.float32)), x_sbe)
    return jnp.dot(h.astype(matmul_dtype), wlin_t, preferred_element_type=jnp.float32) + blin


if __name__ == "__main__":
    batch, seq, embedding_size, hidden_size, num_labels = 2, 8, 16, 32, 4

    key = jax.random.PRNGKey(0)
    k_x, k_p = jax.random.split(key)
    inputs = jax.random.normal(k_x, (batch, seq, embedding_size), jnp.float32)
    raw = init_params(k_p, embedding_size, hidden_size, num_labels)
    kp = prepare_kernel_params(raw, embedding_size, hidden_size, num_labels)

    out = lstm_forward(inputs, kp)
    out = jax.block_until_ready(out)
    assert out.shape == (batch, num_labels)

    # Tight check vs. a reference that mimics the kernel's bf16 MXU operands.
    ref_bf16 = reference_forward(inputs, raw, hidden_size, matmul_dtype=jnp.bfloat16)
    assert jnp.allclose(out, ref_bf16, atol=2e-2, rtol=2e-2)

    # Looser check vs. the exact f32 PyTorch semantics (bf16 operand rounding only).
    ref_f32 = reference_forward(inputs, raw, hidden_size, matmul_dtype=jnp.float32)
    assert jnp.allclose(out, ref_f32, atol=5e-2, rtol=5e-2)

    print("KERNEL_OK")
</pallas_src>

<mosaic_0001>
module attributes {stable_mosaic.version = 11 : i64} {
  func.func @lstm_block_kernel(%arg0: i32, %arg1: memref<8x16x512xf32, #tpu.memory_space<vmem>>, %arg2: memref<128x512xbf16, #tpu.memory_space<vmem>>, %arg3: memref<16x128xbf16, #tpu.memory_space<vmem>>, %arg4: memref<16x128xbf16, #tpu.memory_space<vmem>>, %arg5: memref<16x128xf32, #tpu.memory_space<vmem>>) attributes {dimension_semantics = [#tpu.dimension_semantics<arbitrary>], iteration_bounds = array<i64: 1>, scalar_prefetch = 0 : i64, scratch_operands = 2 : i64, tpu.core_type = #tpu.core_type<tc>, window_params = [{transform_indices = @transform_0, window_bounds = array<i64: 8, 16, 512>}, {pipeline_mode = #tpu.pipeline_mode<synchronous>, transform_indices = @transform_1, window_bounds = array<i64: 128, 512>}, {pipeline_mode = #tpu.pipeline_mode<synchronous>, transform_indices = @transform_2, window_bounds = array<i64: 16, 128>}]} {
    %c0_i32 = arith.constant 0 : i32
    %0 = arith.cmpi eq, %arg0, %c0_i32 : i32
    %1 = arith.extui %0 : i1 to i32
    %c0_i32_0 = arith.constant 0 : i32
    %2 = arith.cmpi ne, %1, %c0_i32_0 : i32
    scf.if %2 {
      %cst_74 = arith.constant 0.000000e+00 : bf16
      %266 = vector.broadcast %cst_74 : bf16 to vector<16x128xbf16>
      %c0_75 = arith.constant 0 : index
      %c0_76 = arith.constant 0 : index
      %267 = vector.load %arg4[%c0_75, %c0_76] : memref<16x128xbf16, #tpu.memory_space<vmem>>, vector<16x128xbf16>
      tpu.vector_store %arg4[%c0_75, %c0_76], %266 {strides = array<i32>} : memref<16x128xbf16, #tpu.memory_space<vmem>>, vector<16x128xbf16>,
      %cst_77 = arith.constant 0.000000e+00 : f32
      %268 = vector.broadcast %cst_77 : f32 to vector<16x128xf32>
      %c0_78 = arith.constant 0 : index
      %c0_79 = arith.constant 0 : index
      %269 = vector.load %arg5[%c0_78, %c0_79] : memref<16x128xf32, #tpu.memory_space<vmem>>, vector<16x128xf32>
      tpu.vector_store %arg5[%c0_78, %c0_79], %268 {strides = array<i32>} : memref<16x128xf32, #tpu.memory_space<vmem>>, vector<16x128xf32>,
    } else {
    }
    %c0 = arith.constant 0 : index
    %c0_1 = arith.constant 0 : index
    %3 = vector.load %arg4[%c0, %c0_1] : memref<16x128xbf16, #tpu.memory_space<vmem>>, vector<16x128xbf16>
    %c0_2 = arith.constant 0 : index
    %c0_3 = arith.constant 0 : index
    %4 = vector.load %arg5[%c0_2, %c0_3] : memref<16x128xf32, #tpu.memory_space<vmem>>, vector<16x128xf32>
    %c0_i32_4 = arith.constant 0 : i32
    %5 = arith.index_cast %c0_i32_4 : i32 to index
    %c0_5 = arith.constant 0 : index
    %c0_6 = arith.constant 0 : index
    %6 = vector.load %arg1[%5, %c0_5, %c0_6] : memref<8x16x512xf32, #tpu.memory_space<vmem>>, vector<1x16x512xf32>
    %7 = vector.shape_cast %6 : vector<1x16x512xf32> to vector<16x512xf32>
    %c0_7 = arith.constant 0 : index
    %c0_8 = arith.constant 0 : index
    %8 = vector.load %arg2[%c0_7, %c0_8] : memref<128x512xbf16, #tpu.memory_space<vmem>>, vector<128x512xbf16>
    %cst = arith.constant dense<0.000000e+00> : vector<16x512xf32>
    %9 = tpu.matmul %3, %8, %cst {dimension_numbers = #tpu.dot_dimension_numbers<[1], [0], [0], [1], [0, 0, 1, 1], [], []>} : vector<16x128xbf16>, vector<128x512xbf16>, vector<16x512xf32> -> vector<16x512xf32>
    %10 = arith.addf %7, %9 : vector<16x512xf32>
    %11 = vector.extract_strided_slice %10 {offsets = [0, 0], sizes = [16, 128], strides = [1, 1]} : vector<16x512xf32> to vector<16x128xf32>
    %12 = arith.negf %11 : vector<16x128xf32>
    %13 = math.exp %12 : vector<16x128xf32>
    %cst_9 = arith.constant 1.000000e+00 : f32
    %14 = vector.broadcast %cst_9 : f32 to vector<16x128xf32>
    %15 = arith.addf %14, %13 : vector<16x128xf32>
    %16 = arith.divf %14, %15 : vector<16x128xf32>
    %17 = vector.extract_strided_slice %10 {offsets = [0, 128], sizes = [16, 128], strides = [1, 1]} : vector<16x512xf32> to vector<16x128xf32>
    %18 = arith.negf %17 : vector<16x128xf32>
    %19 = math.exp %18 : vector<16x128xf32>
    %cst_10 = arith.constant 1.000000e+00 : f32
    %20 = vector.broadcast %cst_10 : f32 to vector<16x128xf32>
    %21 = arith.addf %20, %19 : vector<16x128xf32>
    %22 = arith.divf %20, %21 : vector<16x128xf32>
    %23 = vector.extract_strided_slice %10 {offsets = [0, 256], sizes = [16, 128], strides = [1, 1]} : vector<16x512xf32> to vector<16x128xf32>
    %24 = math.tanh %23 : vector<16x128xf32>
    %25 = vector.extract_strided_slice %10 {offsets = [0, 384], sizes = [16, 128], strides = [1, 1]} : vector<16x512xf32> to vector<16x128xf32>
    %26 = arith.negf %25 : vector<16x128xf32>
    %27 = math.exp %26 : vector<16x128xf32>
    %cst_11 = arith.constant 1.000000e+00 : f32
    %28 = vector.broadcast %cst_11 : f32 to vector<16x128xf32>
    %29 = arith.addf %28, %27 : vector<16x128xf32>
    %30 = arith.divf %28, %29 : vector<16x128xf32>
    %31 = arith.mulf %22, %4 : vector<16x128xf32>
    %32 = arith.mulf %16, %24 : vector<16x128xf32>
    %33 = arith.addf %31, %32 : vector<16x128xf32>
    %34 = math.tanh %33 : vector<16x128xf32>
    %35 = arith.mulf %30, %34 : vector<16x128xf32>
    %36 = arith.truncf %35 : vector<16x128xf32> to vector<16x128xbf16>
    %c1_i32 = arith.constant 1 : i32
    %37 = arith.index_cast %c1_i32 : i32 to index
    %c0_12 = arith.constant 0 : index
    %c0_13 = arith.constant 0 : index
    %38 = vector.load %arg1[%37, %c0_12, %c0_13] : memref<8x16x512xf32, #tpu.memory_space<vmem>>, vector<1x16x512xf32>
    %39 = vector.shape_cast %38 : vector<1x16x512xf32> to vector<16x512xf32>
    %c0_14 = arith.constant 0 : index
    %c0_15 = arith.constant 0 : index
    %40 = vector.load %arg2[%c0_14, %c0_15] : memref<128x512xbf16, #tpu.memory_space<vmem>>, vector<128x512xbf16>
    %cst_16 = arith.constant dense<0.000000e+00> : vector<16x512xf32>
    %41 = tpu.matmul %36, %40, %cst_16 {dimension_numbers = #tpu.dot_dimension_numbers<[1], [0], [0], [1], [0, 0, 1, 1], [], []>} : vector<16x128xbf16>, vector<128x512xbf16>, vector<16x512xf32> -> vector<16x512xf32>
    %42 = arith.addf %39, %41 : vector<16x512xf32>
    %43 = vector.extract_strided_slice %42 {offsets = [0, 0], sizes = [16, 128], strides = [1, 1]} : vector<16x512xf32> to vector<16x128xf32>
    %44 = arith.negf %43 : vector<16x128xf32>
    %45 = math.exp %44 : vector<16x128xf32>
    %cst_17 = arith.constant 1.000000e+00 : f32
    %46 = vector.broadcast %cst_17 : f32 to vector<16x128xf32>
    %47 = arith.addf %46, %45 : vector<16x128xf32>
    %48 = arith.divf %46, %47 : vector<16x128xf32>
    %49 = vector.extract_strided_slice %42 {offsets = [0, 128], sizes = [16, 128], strides = [1, 1]} : vector<16x512xf32> to vector<16x128xf32>
    %50 = arith.negf %49 : vector<16x128xf32>
    %51 = math.exp %50 : vector<16x128xf32>
    %cst_18 = arith.constant 1.000000e+00 : f32
    %52 = vector.broadcast %cst_18 : f32 to vector<16x128xf32>
    %53 = arith.addf %52, %51 : vector<16x128xf32>
    %54 = arith.divf %52, %53 : vector<16x128xf32>
    %55 = vector.extract_strided_slice %42 {offsets = [0, 256], sizes = [16, 128], strides = [1, 1]} : vector<16x512xf32> to vector<16x128xf32>
    %56 = math.tanh %55 : vector<16x128xf32>
    %57 = vector.extract_strided_slice %42 {offsets = [0, 384], sizes = [16, 128], strides = [1, 1]} : vector<16x512xf32> to vector<16x128xf32>
    %58 = arith.negf %57 : vector<16x128xf32>
    %59 = math.exp %58 : vector<16x128xf32>
    %cst_19 = arith.constant 1.000000e+00 : f32
    %60 = vector.broadcast %cst_19 : f32 to vector<16x128xf32>
    %61 = arith.addf %60, %59 : vector<16x128xf32>
    %62 = arith.divf %60, %61 : vector<16x128xf32>
    %63 = arith.mulf %54, %33 : vector<16x128xf32>
    %64 = arith.mulf %48, %56 : vector<16x128xf32>
    %65 = arith.addf %63, %64 : vector<16x128xf32>
    %66 = math.tanh %65 : vector<16x128xf32>
    %67 = arith.mulf %62, %66 : vector<16x128xf32>
    %68 = arith.truncf %67 : vector<16x128xf32> to vector<16x128xbf16>
    %c2_i32 = arith.constant 2 : i32
    %69 = arith.index_cast %c2_i32 : i32 to index
    %c0_20 = arith.constant 0 : index
    %c0_21 = arith.constant 0 : index
    %70 = vector.load %arg1[%69, %c0_20, %c0_21] : memref<8x16x512xf32, #tpu.memory_space<vmem>>, vector<1x16x512xf32>
    %71 = vector.shape_cast %70 : vector<1x16x512xf32> to vector<16x512xf32>
    %c0_22 = arith.constant 0 : index
    %c0_23 = arith.constant 0 : index
    %72 = vector.load %arg2[%c0_22, %c0_23] : memref<128x512xbf16, #tpu.memory_space<vmem>>, vector<128x512xbf16>
    %cst_24 = arith.constant dense<0.000000e+00> : vector<16x512xf32>
    %73 = tpu.matmul %68, %72, %cst_24 {dimension_numbers = #tpu.dot_dimension_numbers<[1], [0], [0], [1], [0, 0, 1, 1], [], []>} : vector<16x128xbf16>, vector<128x512xbf16>, vector<16x512xf32> -> vector<16x512xf32>
    %74 = arith.addf %71, %73 : vector<16x512xf32>
    %75 = vector.extract_strided_slice %74 {offsets = [0, 0], sizes = [16, 128], strides = [1, 1]} : vector<16x512xf32> to vector<16x128xf32>
    %76 = arith.negf %75 : vector<16x128xf32>
    %77 = math.exp %76 : vector<16x128xf32>
    %cst_25 = arith.constant 1.000000e+00 : f32
    %78 = vector.broadcast %cst_25 : f32 to vector<16x128xf32>
    %79 = arith.addf %78, %77 : vector<16x128xf32>
    %80 = arith.divf %78, %79 : vector<16x128xf32>
    %81 = vector.extract_strided_slice %74 {offsets = [0, 128], sizes = [16, 128], strides = [1, 1]} : vector<16x512xf32> to vector<16x128xf32>
    %82 = arith.negf %81 : vector<16x128xf32>
    %83 = math.exp %82 : vector<16x128xf32>
    %cst_26 = arith.constant 1.000000e+00 : f32
    %84 = vector.broadcast %cst_26 : f32 to vector<16x128xf32>
    %85 = arith.addf %84, %83 : vector<16x128xf32>
    %86 = arith.divf %84, %85 : vector<16x128xf32>
    %87 = vector.extract_strided_slice %74 {offsets = [0, 256], sizes = [16, 128], strides = [1, 1]} : vector<16x512xf32> to vector<16x128xf32>
    %88 = math.tanh %87 : vector<16x128xf32>
    %89 = vector.extract_strided_slice %74 {offsets = [0, 384], sizes = [16, 128], strides = [1, 1]} : vector<16x512xf32> to vector<16x128xf32>
    %90 = arith.negf %89 : vector<16x128xf32>
    %91 = math.exp %90 : vector<16x128xf32>
    %cst_27 = arith.constant 1.000000e+00 : f32
    %92 = vector.broadcast %cst_27 : f32 to vector<16x128xf32>
    %93 = arith.addf %92, %91 : vector<16x128xf32>
    %94 = arith.divf %92, %93 : vector<16x128xf32>
    %95 = arith.mulf %86, %65 : vector<16x128xf32>
    %96 = arith.mulf %80, %88 : vector<16x128xf32>
    %97 = arith.addf %95, %96 : vector<16x128xf32>
    %98 = math.tanh %97 : vector<16x128xf32>
    %99 = arith.mulf %94, %98 : vector<16x128xf32>
    %100 = arith.truncf %99 : vector<16x128xf32> to vector<16x128xbf16>
    %c3_i32 = arith.constant 3 : i32
    %101 = arith.index_cast %c3_i32 : i32 to index
    %c0_28 = arith.constant 0 : index
    %c0_29 = arith.constant 0 : index
    %102 = vector.load %arg1[%101, %c0_28, %c0_29] : memref<8x16x512xf32, #tpu.memory_space<vmem>>, vector<1x16x512xf32>
    %103 = vector.shape_cast %102 : vector<1x16x512xf32> to vector<16x512xf32>
    %c0_30 = arith.constant 0 : index
    %c0_31 = arith.constant 0 : index
    %104 = vector.load %arg2[%c0_30, %c0_31] : memref<128x512xbf16, #tpu.memory_space<vmem>>, vector<128x512xbf16>
    %cst_32 = arith.constant dense<0.000000e+00> : vector<16x512xf32>
    %105 = tpu.matmul %100, %104, %cst_32 {dimension_numbers = #tpu.dot_dimension_numbers<[1], [0], [0], [1], [0, 0, 1, 1], [], []>} : vector<16x128xbf16>, vector<128x512xbf16>, vector<16x512xf32> -> vector<16x512xf32>
    %106 = arith.addf %103, %105 : vector<16x512xf32>
    %107 = vector.extract_strided_slice %106 {offsets = [0, 0], sizes = [16, 128], strides = [1, 1]} : vector<16x512xf32> to vector<16x128xf32>
    %108 = arith.negf %107 : vector<16x128xf32>
    %109 = math.exp %108 : vector<16x128xf32>
    %cst_33 = arith.constant 1.000000e+00 : f32
    %110 = vector.broadcast %cst_33 : f32 to vector<16x128xf32>
    %111 = arith.addf %110, %109 : vector<16x128xf32>
    %112 = arith.divf %110, %111 : vector<16x128xf32>
    %113 = vector.extract_strided_slice %106 {offsets = [0, 128], sizes = [16, 128], strides = [1, 1]} : vector<16x512xf32> to vector<16x128xf32>
    %114 = arith.negf %113 : vector<16x128xf32>
    %115 = math.exp %114 : vector<16x128xf32>
    %cst_34 = arith.constant 1.000000e+00 : f32
    %116 = vector.broadcast %cst_34 : f32 to vector<16x128xf32>
    %117 = arith.addf %116, %115 : vector<16x128xf32>
    %118 = arith.divf %116, %117 : vector<16x128xf32>
    %119 = vector.extract_strided_slice %106 {offsets = [0, 256], sizes = [16, 128], strides = [1, 1]} : vector<16x512xf32> to vector<16x128xf32>
    %120 = math.tanh %119 : vector<16x128xf32>
    %121 = vector.extract_strided_slice %106 {offsets = [0, 384], sizes = [16, 128], strides = [1, 1]} : vector<16x512xf32> to vector<16x128xf32>
    %122 = arith.negf %121 : vector<16x128xf32>
    %123 = math.exp %122 : vector<16x128xf32>
    %cst_35 = arith.constant 1.000000e+00 : f32
    %124 = vector.broadcast %cst_35 : f32 to vector<16x128xf32>
    %125 = arith.addf %124, %123 : vector<16x128xf32>
    %126 = arith.divf %124, %125 : vector<16x128xf32>
    %127 = arith.mulf %118, %97 : vector<16x128xf32>
    %128 = arith.mulf %112, %120 : vector<16x128xf32>
    %129 = arith.addf %127, %128 : vector<16x128xf32>
    %130 = math.tanh %129 : vector<16x128xf32>
    %131 = arith.mulf %126, %130 : vector<16x128xf32>
    %132 = arith.truncf %131 : vector<16x128xf32> to vector<16x128xbf16>
    %c4_i32 = arith.constant 4 : i32
    %133 = arith.index_cast %c4_i32 : i32 to index
    %c0_36 = arith.constant 0 : index
    %c0_37 = arith.constant 0 : index
    %134 = vector.load %arg1[%133, %c0_36, %c0_37] : memref<8x16x512xf32, #tpu.memory_space<vmem>>, vector<1x16x512xf32>
    %135 = vector.shape_cast %134 : vector<1x16x512xf32> to vector<16x512xf32>
    %c0_38 = arith.constant 0 : index
    %c0_39 = arith.constant 0 : index
    %136 = vector.load %arg2[%c0_38, %c0_39] : memref<128x512xbf16, #tpu.memory_space<vmem>>, vector<128x512xbf16>
    %cst_40 = arith.constant dense<0.000000e+00> : vector<16x512xf32>
    %137 = tpu.matmul %132, %136, %cst_40 {dimension_numbers = #tpu.dot_dimension_numbers<[1], [0], [0], [1], [0, 0, 1, 1], [], []>} : vector<16x128xbf16>, vector<128x512xbf16>, vector<16x512xf32> -> vector<16x512xf32>
    %138 = arith.addf %135, %137 : vector<16x512xf32>
    %139 = vector.extract_strided_slice %138 {offsets = [0, 0], sizes = [16, 128], strides = [1, 1]} : vector<16x512xf32> to vector<16x128xf32>
    %140 = arith.negf %139 : vector<16x128xf32>
    %141 = math.exp %140 : vector<16x128xf32>
    %cst_41 = arith.constant 1.000000e+00 : f32
    %142 = vector.broadcast %cst_41 : f32 to vector<16x128xf32>
    %143 = arith.addf %142, %141 : vector<16x128xf32>
    %144 = arith.divf %142, %143 : vector<16x128xf32>
    %145 = vector.extract_strided_slice %138 {offsets = [0, 128], sizes = [16, 128], strides = [1, 1]} : vector<16x512xf32> to vector<16x128xf32>
    %146 = arith.negf %145 : vector<16x128xf32>
    %147 = math.exp %146 : vector<16x128xf32>
    %cst_42 = arith.constant 1.000000e+00 : f32
    %148 = vector.broadcast %cst_42 : f32 to vector<16x128xf32>
    %149 = arith.addf %148, %147 : vector<16x128xf32>
    %150 = arith.divf %148, %149 : vector<16x128xf32>
    %151 = vector.extract_strided_slice %138 {offsets = [0, 256], sizes = [16, 128], strides = [1, 1]} : vector<16x512xf32> to vector<16x128xf32>
    %152 = math.tanh %151 : vector<16x128xf32>
    %153 = vector.extract_strided_slice %138 {offsets = [0, 384], sizes = [16, 128], strides = [1, 1]} : vector<16x512xf32> to vector<16x128xf32>
    %154 = arith.negf %153 : vector<16x128xf32>
    %155 = math.exp %154 : vector<16x128xf32>
    %cst_43 = arith.constant 1.000000e+00 : f32
    %156 = vector.broadcast %cst_43 : f32 to vector<16x128xf32>
    %157 = arith.addf %156, %155 : vector<16x128xf32>
    %158 = arith.divf %156, %157 : vector<16x128xf32>
    %159 = arith.mulf %150, %129 : vector<16x128xf32>
    %160 = arith.mulf %144, %152 : vector<16x128xf32>
    %161 = arith.addf %159, %160 : vector<16x128xf32>
    %162 = math.tanh %161 : vector<16x128xf32>
    %163 = arith.mulf %158, %162 : vector<16x128xf32>
    %164 = arith.truncf %163 : vector<16x128xf32> to vector<16x128xbf16>
    %c5_i32 = arith.constant 5 : i32
    %165 = arith.index_cast %c5_i32 : i32 to index
    %c0_44 = arith.constant 0 : index
    %c0_45 = arith.constant 0 : index
    %166 = vector.load %arg1[%165, %c0_44, %c0_45] : memref<8x16x512xf32, #tpu.memory_space<vmem>>, vector<1x16x512xf32>
    %167 = vector.shape_cast %166 : vector<1x16x512xf32> to vector<16x512xf32>
    %c0_46 = arith.constant 0 : index
    %c0_47 = arith.constant 0 : index
    %168 = vector.load %arg2[%c0_46, %c0_47] : memref<128x512xbf16, #tpu.memory_space<vmem>>, vector<128x512xbf16>
    %cst_48 = arith.constant dense<0.000000e+00> : vector<16x512xf32>
    %169 = tpu.matmul %164, %168, %cst_48 {dimension_numbers = #tpu.dot_dimension_numbers<[1], [0], [0], [1], [0, 0, 1, 1], [], []>} : vector<16x128xbf16>, vector<128x512xbf16>, vector<16x512xf32> -> vector<16x512xf32>
    %170 = arith.addf %167, %169 : vector<16x512xf32>
    %171 = vector.extract_strided_slice %170 {offsets = [0, 0], sizes = [16, 128], strides = [1, 1]} : vector<16x512xf32> to vector<16x128xf32>
    %172 = arith.negf %171 : vector<16x128xf32>
    %173 = math.exp %172 : vector<16x128xf32>
    %cst_49 = arith.constant 1.000000e+00 : f32
    %174 = vector.broadcast %cst_49 : f32 to vector<16x128xf32>
    %175 = arith.addf %174, %173 : vector<16x128xf32>
    %176 = arith.divf %174, %175 : vector<16x128xf32>
    %177 = vector.extract_strided_slice %170 {offsets = [0, 128], sizes = [16, 128], strides = [1, 1]} : vector<16x512xf32> to vector<16x128xf32>
    %178 = arith.negf %177 : vector<16x128xf32>
    %179 = math.exp %178 : vector<16x128xf32>
    %cst_50 = arith.constant 1.000000e+00 : f32
    %180 = vector.broadcast %cst_50 : f32 to vector<16x128xf32>
    %181 = arith.addf %180, %179 : vector<16x128xf32>
    %182 = arith.divf %180, %181 : vector<16x128xf32>
    %183 = vector.extract_strided_slice %170 {offsets = [0, 256], sizes = [16, 128], strides = [1, 1]} : vector<16x512xf32> to vector<16x128xf32>
    %184 = math.tanh %183 : vector<16x128xf32>
    %185 = vector.extract_strided_slice %170 {offsets = [0, 384], sizes = [16, 128], strides = [1, 1]} : vector<16x512xf32> to vector<16x128xf32>
    %186 = arith.negf %185 : vector<16x128xf32>
    %187 = math.exp %186 : vector<16x128xf32>
    %cst_51 = arith.constant 1.000000e+00 : f32
    %188 = vector.broadcast %cst_51 : f32 to vector<16x128xf32>
    %189 = arith.addf %188, %187 : vector<16x128xf32>
    %190 = arith.divf %188, %189 : vector<16x128xf32>
    %191 = arith.mulf %182, %161 : vector<16x128xf32>
    %192 = arith.mulf %176, %184 : vector<16x128xf32>
    %193 = arith.addf %191, %192 : vector<16x128xf32>
    %194 = math.tanh %193 : vector<16x128xf32>
    %195 = arith.mulf %190, %194 : vector<16x128xf32>
    %196 = arith.truncf %195 : vector<16x128xf32> to vector<16x128xbf16>
    %c6_i32 = arith.constant 6 : i32
    %197 = arith.index_cast %c6_i32 : i32 to index
    %c0_52 = arith.constant 0 : index
    %c0_53 = arith.constant 0 : index
    %198 = vector.load %arg1[%197, %c0_52, %c0_53] : memref<8x16x512xf32, #tpu.memory_space<vmem>>, vector<1x16x512xf32>
    %199 = vector.shape_cast %198 : vector<1x16x512xf32> to vector<16x512xf32>
    %c0_54 = arith.constant 0 : index
    %c0_55 = arith.constant 0 : index
    %200 = vector.load %arg2[%c0_54, %c0_55] : memref<128x512xbf16, #tpu.memory_space<vmem>>, vector<128x512xbf16>
    %cst_56 = arith.constant dense<0.000000e+00> : vector<16x512xf32>
    %201 = tpu.matmul %196, %200, %cst_56 {dimension_numbers = #tpu.dot_dimension_numbers<[1], [0], [0], [1], [0, 0, 1, 1], [], []>} : vector<16x128xbf16>, vector<128x512xbf16>, vector<16x512xf32> -> vector<16x512xf32>
    %202 = arith.addf %199, %201 : vector<16x512xf32>
    %203 = vector.extract_strided_slice %202 {offsets = [0, 0], sizes = [16, 128], strides = [1, 1]} : vector<16x512xf32> to vector<16x128xf32>
    %204 = arith.negf %203 : vector<16x128xf32>
    %205 = math.exp %204 : vector<16x128xf32>
    %cst_57 = arith.constant 1.000000e+00 : f32
    %206 = vector.broadcast %cst_57 : f32 to vector<16x128xf32>
    %207 = arith.addf %206, %205 : vector<16x128xf32>
    %208 = arith.divf %206, %207 : vector<16x128xf32>
    %209 = vector.extract_strided_slice %202 {offsets = [0, 128], sizes = [16, 128], strides = [1, 1]} : vector<16x512xf32> to vector<16x128xf32>
    %210 = arith.negf %209 : vector<16x128xf32>
    %211 = math.exp %210 : vector<16x128xf32>
    %cst_58 = arith.constant 1.000000e+00 : f32
    %212 = vector.broadcast %cst_58 : f32 to vector<16x128xf32>
    %213 = arith.addf %212, %211 : vector<16x128xf32>
    %214 = arith.divf %212, %213 : vector<16x128xf32>
    %215 = vector.extract_strided_slice %202 {offsets = [0, 256], sizes = [16, 128], strides = [1, 1]} : vector<16x512xf32> to vector<16x128xf32>
    %216 = math.tanh %215 : vector<16x128xf32>
    %217 = vector.extract_strided_slice %202 {offsets = [0, 384], sizes = [16, 128], strides = [1, 1]} : vector<16x512xf32> to vector<16x128xf32>
    %218 = arith.negf %217 : vector<16x128xf32>
    %219 = math.exp %218 : vector<16x128xf32>
    %cst_59 = arith.constant 1.000000e+00 : f32
    %220 = vector.broadcast %cst_59 : f32 to vector<16x128xf32>
    %221 = arith.addf %220, %219 : vector<16x128xf32>
    %222 = arith.divf %220, %221 : vector<16x128xf32>
    %223 = arith.mulf %214, %193 : vector<16x128xf32>
    %224 = arith.mulf %208, %216 : vector<16x128xf32>
    %225 = arith.addf %223, %224 : vector<16x128xf32>
    %226 = math.tanh %225 : vector<16x128xf32>
    %227 = arith.mulf %222, %226 : vector<16x128xf32>
    %228 = arith.truncf %227 : vector<16x128xf32> to vector<16x128xbf16>
    %c7_i32 = arith.constant 7 : i32
    %229 = arith.index_cast %c7_i32 : i32 to index
    %c0_60 = arith.constant 0 : index
    %c0_61 = arith.constant 0 : index
    %230 = vector.load %arg1[%229, %c0_60, %c0_61] : memref<8x16x512xf32, #tpu.memory_space<vmem>>, vector<1x16x512xf32>
    %231 = vector.shape_cast %230 : vector<1x16x512xf32> to vector<16x512xf32>
    %c0_62 = arith.constant 0 : index
    %c0_63 = arith.constant 0 : index
    %232 = vector.load %arg2[%c0_62, %c0_63] : memref<128x512xbf16, #tpu.memory_space<vmem>>, vector<128x512xbf16>
    %cst_64 = arith.constant dense<0.000000e+00> : vector<16x512xf32>
    %233 = tpu.matmul %228, %232, %cst_64 {dimension_numbers = #tpu.dot_dimension_numbers<[1], [0], [0], [1], [0, 0, 1, 1], [], []>} : vector<16x128xbf16>, vector<128x512xbf16>, vector<16x512xf32> -> vector<16x512xf32>
    %234 = arith.addf %231, %233 : vector<16x512xf32>
    %235 = vector.extract_strided_slice %234 {offsets = [0, 0], sizes = [16, 128], strides = [1, 1]} : vector<16x512xf32> to vector<16x128xf32>
    %236 = arith.negf %235 : vector<16x128xf32>
    %237 = math.exp %236 : vector<16x128xf32>
    %cst_65 = arith.constant 1.000000e+00 : f32
    %238 = vector.broadcast %cst_65 : f32 to vector<16x128xf32>
    %239 = arith.addf %238, %237 : vector<16x128xf32>
    %240 = arith.divf %238, %239 : vector<16x128xf32>
    %241 = vector.extract_strided_slice %234 {offsets = [0, 128], sizes = [16, 128], strides = [1, 1]} : vector<16x512xf32> to vector<16x128xf32>
    %242 = arith.negf %241 : vector<16x128xf32>
    %243 = math.exp %242 : vector<16x128xf32>
    %cst_66 = arith.constant 1.000000e+00 : f32
    %244 = vector.broadcast %cst_66 : f32 to vector<16x128xf32>
    %245 = arith.addf %244, %243 : vector<16x128xf32>
    %246 = arith.divf %244, %245 : vector<16x128xf32>
    %247 = vector.extract_strided_slice %234 {offsets = [0, 256], sizes = [16, 128], strides = [1, 1]} : vector<16x512xf32> to vector<16x128xf32>
    %248 = math.tanh %247 : vector<16x128xf32>
    %249 = vector.extract_strided_slice %234 {offsets = [0, 384], sizes = [16, 128], strides = [1, 1]} : vector<16x512xf32> to vector<16x128xf32>
    %250 = arith.negf %249 : vector<16x128xf32>
    %251 = math.exp %250 : vector<16x128xf32>
    %cst_67 = arith.constant 1.000000e+00 : f32
    %252 = vector.broadcast %cst_67 : f32 to vector<16x128xf32>
    %253 = arith.addf %252, %251 : vector<16x128xf32>
    %254 = arith.divf %252, %253 : vector<16x128xf32>
    %255 = arith.mulf %246, %225 : vector<16x128xf32>
    %256 = arith.mulf %240, %248 : vector<16x128xf32>
    %257 = arith.addf %255, %256 : vector<16x128xf32>
    %258 = math.tanh %257 : vector<16x128xf32>
    %259 = arith.mulf %254, %258 : vector<16x128xf32>
    %260 = arith.truncf %259 : vector<16x128xf32> to vector<16x128xbf16>
    %c8_i32 = arith.constant 8 : i32
    %c0_68 = arith.constant 0 : index
    %c0_69 = arith.constant 0 : index
    %261 = vector.load %arg4[%c0_68, %c0_69] : memref<16x128xbf16, #tpu.memory_space<vmem>>, vector<16x128xbf16>
    tpu.vector_store %arg4[%c0_68, %c0_69], %260 {strides = array<i32>} : memref<16x128xbf16, #tpu.memory_space<vmem>>, vector<16x128xbf16>,
    %c0_70 = arith.constant 0 : index
    %c0_71 = arith.constant 0 : index
    %262 = vector.load %arg5[%c0_70, %c0_71] : memref<16x128xf32, #tpu.memory_space<vmem>>, vector<16x128xf32>
    tpu.vector_store %arg5[%c0_70, %c0_71], %257 {strides = array<i32>} : memref<16x128xf32, #tpu.memory_space<vmem>>, vector<16x128xf32>,
    %c0_i32_72 = arith.constant 0 : i32
    %263 = arith.cmpi eq, %arg0, %c0_i32_72 : i32
    %264 = arith.extui %263 : i1 to i32
    %c0_i32_73 = arith.constant 0 : i32
    %265 = arith.cmpi ne, %264, %c0_i32_73 : i32
    scf.if %265 {
      %c0_74 = arith.constant 0 : index
      %c0_75 = arith.constant 0 : index
      %266 = vector.load %arg3[%c0_74, %c0_75] : memref<16x128xbf16, #tpu.memory_space<vmem>>, vector<16x128xbf16>
      tpu.vector_store %arg3[%c0_74, %c0_75], %260 {strides = array<i32>} : memref<16x128xbf16, #tpu.memory_space<vmem>>, vector<16x128xbf16>,
    } else {
    }
    return
  }
  func.func @transform_0(%arg0: i32) -> (i32, i32, i32) {
    %c0_i32 = arith.constant 0 : i32
    %c0_i32_0 = arith.constant 0 : i32
    %c0_i32_1 = arith.constant 0 : i32
    return %arg0, %c0_i32, %c0_i32_0 : i32, i32, i32
  }
  func.func @transform_1(%arg0: i32) -> (i32, i32) {
    %c0_i32 = arith.constant 0 : i32
    %c0_i32_0 = arith.constant 0 : i32
    %c0_i32_1 = arith.constant 0 : i32
    return %c0_i32, %c0_i32_0 : i32, i32
  }
  func.func @transform_2(%arg0: i32) -> (i32, i32) {
    %c0_i32 = arith.constant 0 : i32
    %c0_i32_0 = arith.constant 0 : i32
    %c0_i32_1 = arith.constant 0 : i32
    return %c0_i32, %c0_i32_0 : i32, i32
  }
}

</mosaic_0001>

<bundles_post_ra>
// kernel: lstm_forward.1
= control target key start
LH: loop header
LB: loop body
LE: loop exit
PB: predicated region body
PF: predicated region fallthrough
CT: control target
= control target key end

     0   :  { %v1946_v1 = vmov 0   ;;  %s2807_s1 = inlined_call_operand.vmem [shape: bf16[128,512], index: 1, kind: input, shape index: {}]   ;;  %s2808_s0 = inlined_call_operand.vmem [shape: f32[8,16,512], index: 0, kind: input, shape index: {}]   ;;  %s2809_s2 = inlined_call_operand.vmem [shape: bf16[16,128], index: 2, kind: output, shape index: {}]  }
   0x1   :  { %v1965_v0 = vld [vmem:[%s2807_s1 + $0xe4] ss:$16 sps:$4 sm:$0xff]   ;;  %262 = vmatprep.mubr.bf16.mxu0 %v1946_v1  ;;  %16 = vst [vmem:[#allocation2] sm:$0xf] %v1946_v1  ;;  %17 = vst [vmem:[#allocation2 + $0x4] sm:$0xf] %v1946_v1  ;;  %305 = vmatprep.mubr.bf16.mxu1 %v1946_v1 }
   0x2   :  { %v1974_v2 = vld [vmem:[%s2807_s1 + $0xe0] ss:$16 sps:$4 sm:$0xff]   ;;  %230 = vmatprep.subr.bf16.mxu0 %v1965_v0  ;;  %v1980_v3 = vld [vmem:[%s2807_s1 + $0xc4] ss:$16 sps:$4 sm:$0xff]   ;;  %v1997_v6 = vld [vmem:[%s2807_s1 + $0xec] ss:$16 sps:$4 sm:$0xff]  }
   0x3   :  { %231 = vmatpush1.bf16.msra.mxu0 %v1974_v2  ;;  %v1986_v4 = vld [vmem:[%s2807_s1 + $0xc0] ss:$16 sps:$4 sm:$0xff]   ;;  %v1992_v5 = vld [vmem:[%s2807_s1 + $0xa4] ss:$16 sps:$4 sm:$0xff]   ;;  %v2002_v7 = vld [vmem:[%s2807_s1 + $0xe8] ss:$16 sps:$4 sm:$0xff]   ;;  %273 = vmatprep.subr.bf16.mxu1 %v1997_v6 }
   0x4   :  { %232 = vmatprep.subr.bf16.mxu0 %v1980_v3  ;;  %v2008_v8 = vld [vmem:[%s2807_s1 + $0xa0] ss:$16 sps:$4 sm:$0xff]   ;;  %v2015_v9 = vld [vmem:[%s2807_s1 + $0x84] ss:$16 sps:$4 sm:$0xff]   ;;  %274 = vmatpush1.bf16.msra.mxu1 %v2002_v7  ;;  %v2021_v10 = vld [vmem:[%s2807_s1 + $0xcc] ss:$16 sps:$4 sm:$0xff]  }
   0x5   :  { %v2026_v11 = vld [vmem:[%s2807_s1 + $0xc8] ss:$16 sps:$4 sm:$0xff]   ;;  %275 = vmatprep.subr.bf16.mxu1 %v2021_v10  ;;  %v2033_v12 = vld [vmem:[%s2807_s1 + $0x80] ss:$16 sps:$4 sm:$0xff]   ;;  %v2038_v13 = vld [vmem:[%s2807_s1 + $0x64] ss:$16 sps:$4 sm:$0xff]  }
   0x6   :  { %v2043_v14 = vld [vmem:[%s2807_s1 + $0xac] ss:$16 sps:$4 sm:$0xff]   ;;  %v2050_v15 = vld [vmem:[%s2807_s1 + $0xa8] ss:$16 sps:$4 sm:$0xff]   ;;  %v2062_v17 = vld [vmem:[%s2807_s1 + $0x60] ss:$16 sps:$4 sm:$0xff]  }
   0x7   :  { %233 = vmatpush1.bf16.msra.mxu0 %v1986_v4  ;;  %v2056_v16 = vld [vmem:[%s2807_s1 + $0x8c] ss:$16 sps:$4 sm:$0xff]   ;;  %v2068_v18 = vld [vmem:[%s2807_s1 + $0x44] ss:$16 sps:$4 sm:$0xff]   ;;  %v2074_v19 = vld [vmem:[%s2807_s1 + $0x88] ss:$16 sps:$4 sm:$0xff]  }
   0x8   :  { %234 = vmatprep.subr.bf16.mxu0 %v1992_v5  ;;  %276 = vmatpush1.bf16.msra.mxu1 %v2026_v11  ;;  %v2080_v20 = vld [vmem:[%s2807_s1 + $0x6c] ss:$16 sps:$4 sm:$0xff]   ;;  %v2086_v21 = vld [vmem:[%s2807_s1 + $0x40] ss:$16 sps:$4 sm:$0xff]   ;;  %v2092_v22 = vld [vmem:[%s2807_s1 + $0x24] ss:$16 sps:$4 sm:$0xff]  }
   0x9   :  { %277 = vmatprep.subr.bf16.mxu1 %v2043_v14  ;;  %v2098_v23 = vld [vmem:[%s2807_s1 + $0x68] ss:$16 sps:$4 sm:$0xff]   ;;  %v2104_v24 = vld [vmem:[%s2807_s1 + $0x4c] ss:$16 sps:$4 sm:$0xff]   ;;  %v2110_v25 = vld [vmem:[%s2807_s1 + $0x20] ss:$16 sps:$4 sm:$0xff]  }
   0xa   :  { %v2116_v26 = vld [vmem:[%s2807_s1 + $0x4] ss:$16 sps:$4 sm:$0xff]   ;;  %v2122_v27 = vld [vmem:[%s2807_s1 + $0x48] ss:$16 sps:$4 sm:$0xff]   ;;  %v2128_v28 = vld [vmem:[%s2807_s1 + $0x2c] ss:$16 sps:$4 sm:$0xff]  }
   0xb   :  { %235 = vmatpush1.bf16.msra.mxu0 %v2008_v8  ;;  %v2134_v29 = vld [vmem:[%s2807_s1] ss:$16 sps:$4 sm:$0xff]   ;;  %v2141_v30 = vld [vmem:[%s2807_s1 + $0x28] ss:$16 sps:$4 sm:$0xff]   ;;  %v2147_v31 = vld [vmem:[%s2807_s1 + $0xc] ss:$16 sps:$4 sm:$0xff]  }
   0xc   :  { %236 = vmatprep.subr.bf16.mxu0 %v2015_v9  ;;  %278 = vmatpush1.bf16.msra.mxu1 %v2050_v15  ;;  %v1648_v32 = vld [vmem:[#allocation2] sm:$0xff]   ;;  %v2154_v33 = vld [vmem:[%s2807_s1 + $0x8] ss:$16 sps:$4 sm:$0xff]   ;;  %v26_v54 = vld [vmem:[%s2808_s0 + $0x10] sm:$0xff] }
   0xd   :  { %279 = vmatprep.subr.bf16.mxu1 %v2056_v16  ;;  %v24_v34 = vld [vmem:[%s2808_s0] sm:$0xff]  ;;  %v25_v36 = vld [vmem:[%s2808_s0 + $0x8] sm:$0xff]  ;;  %v27_v53 = vld [vmem:[%s2808_s0 + $0x18] sm:$0xff] }
   0xe   :  { %v28_v39 = vld [vmem:[%s2808_s0 + $0x20] sm:$0xff]  ;;  %v29_v43 = vld [vmem:[%s2808_s0 + $0x28] sm:$0xff]  ;;  %v31_v55 = vld [vmem:[%s2808_s0 + $0x38] sm:$0xff] }
   0xf   :  { %237 = vmatpush1.bf16.msra.mxu0 %v2033_v12  ;;  %v30_v63 = vld [vmem:[%s2808_s0 + $0x30] sm:$0xff] }
  0x10   :  { %238 = vmatprep.subr.bf16.mxu0 %v2038_v13  ;;  %280 = vmatpush1.bf16.msra.mxu1 %v2074_v19 }
  0x11   :  { %281 = vmatprep.subr.bf16.mxu1 %v2080_v20 }
  0x13   :  { %239 = vmatpush1.bf16.msra.mxu0 %v2062_v17 }
  0x14   :  { %240 = vmatprep.subr.bf16.mxu0 %v2068_v18  ;;  %282 = vmatpush1.bf16.msra.mxu1 %v2098_v23 }
  0x15   :  { %283 = vmatprep.subr.bf16.mxu1 %v2104_v24 }
  0x17   :  { %241 = vmatpush1.bf16.msra.mxu0 %v2086_v21 }
  0x18   :  { %242 = vmatprep.subr.bf16.mxu0 %v2092_v22  ;;  %284 = vmatpush1.bf16.msra.mxu1 %v2122_v27 }
  0x19   :  { %285 = vmatprep.subr.bf16.mxu1 %v2128_v28 }
  0x1b   :  { %243 = vmatpush1.bf16.msra.mxu0 %v2110_v25 }
  0x1c   :  { %244 = vmatprep.subr.bf16.mxu0 %v2116_v26  ;;  %286 = vmatpush1.bf16.msra.mxu1 %v2141_v30 }
  0x1d   :  { %287 = vmatprep.subr.bf16.mxu1 %v2147_v31 }
  0x1f   :  { %245 = vmatpush1.bf16.msra.mxu0 %v2134_v29 }
  0x20   :  { %382 = vmatprep.subr.bf16.mxu0 %v1965_v0  ;;  %288 = vmatpush1.bf16.msra.mxu1 %v2154_v33 }
  0x21   :  { %425 = vmatprep.subr.bf16.mxu1 %v1997_v6 }
  0x22   :  { %263 = vmatmul.mubr.bf16.vlgmr.msra.gmra.mxu0 %v1648_v32 }
  0x23   :  { %383 = vmatpush1.bf16.msra.mxu0 %v1974_v2  ;;  %414 = vmatprep.mubr.bf16.mxu0 %v1946_v1 }
  0x24   :  { %384 = vmatprep.subr.bf16.mxu0 %v1980_v3  ;;  %306 = vmatmul.mubr.bf16.vlgmr.msra.gmra.mxu1 %v1648_v32 }
  0x25   :  { %426 = vmatpush1.bf16.msra.mxu1 %v2002_v7  ;;  %457 = vmatprep.mubr.bf16.mxu1 %v1946_v1 }
  0x26   :  { %427 = vmatprep.subr.bf16.mxu1 %v2021_v10 }
  0x27   :  { %385 = vmatpush1.bf16.msra.mxu0 %v1986_v4 }
  0x28   :  { %386 = vmatprep.subr.bf16.mxu0 %v1992_v5 }
  0x29   :  { %428 = vmatpush1.bf16.msra.mxu1 %v2026_v11 }
  0x2a   :  { %429 = vmatprep.subr.bf16.mxu1 %v2043_v14 }
  0x2b   :  { %387 = vmatpush1.bf16.msra.mxu0 %v2008_v8 }
  0x2c   :  { %388 = vmatprep.subr.bf16.mxu0 %v2015_v9 }
  0x2d   :  { %430 = vmatpush1.bf16.msra.mxu1 %v2050_v15 }
  0x2e   :  { %431 = vmatprep.subr.bf16.mxu1 %v2056_v16 }
  0x2f   :  { %389 = vmatpush1.bf16.msra.mxu0 %v2033_v12 }
  0x30   :  { %390 = vmatprep.subr.bf16.mxu0 %v2038_v13 }
  0x31   :  { %432 = vmatpush1.bf16.msra.mxu1 %v2074_v19 }
  0x32   :  { %433 = vmatprep.subr.bf16.mxu1 %v2080_v20 }
  0x33   :  { %391 = vmatpush1.bf16.msra.mxu0 %v2062_v17 }
  0x34   :  { %392 = vmatprep.subr.bf16.mxu0 %v2068_v18 }
  0x35   :  { %434 = vmatpush1.bf16.msra.mxu1 %v2098_v23 }
  0x36   :  { %435 = vmatprep.subr.bf16.mxu1 %v2104_v24 }
  0x37   :  { %393 = vmatpush1.bf16.msra.mxu0 %v2086_v21 }
  0x38   :  { %394 = vmatprep.subr.bf16.mxu0 %v2092_v22 }
  0x39   :  { %436 = vmatpush1.bf16.msra.mxu1 %v2122_v27 }
  0x3a   :  { %437 = vmatprep.subr.bf16.mxu1 %v2128_v28 }
  0x3b   :  { %395 = vmatpush1.bf16.msra.mxu0 %v2110_v25 }
  0x3c   :  { %396 = vmatprep.subr.bf16.mxu0 %v2116_v26 }
  0x3d   :  { %438 = vmatpush1.bf16.msra.mxu1 %v2141_v30 }
  0x3e   :  { %439 = vmatprep.subr.bf16.mxu1 %v2147_v31 }
  0x3f   :  { %397 = vmatpush1.bf16.msra.mxu0 %v2134_v29 }
  0x40   :  { %534 = vmatprep.subr.bf16.mxu0 %v1965_v0 }
  0x41   :  { %440 = vmatpush1.bf16.msra.mxu1 %v2154_v33 }
  0x42   :  { %577 = vmatprep.subr.bf16.mxu1 %v1997_v6 }
  0xe2   :  { %v264_v35 = vpop.f32.mrf.mxu0 }
  0xe3   :  { %v316_v37 = vadd.f32 %v264_v35, %v24_v34 }
  0xe4   :  { %v266_v38 = vpop.f32.mrf.mxu0  ;;  %v307_v46 = vpop.f32.mrf.mxu1 }
  0xe5   :  { %v1490_v40 = vmul.f32 -1.442695, %v316_v37  ;;  %v317_v41 = vadd.f32 %v266_v38, %v25_v36  ;;  %v318_v58 = vadd.f32 %v307_v46, %v26_v54 }
  0xe6   :  { %v268_v42 = vpop.f32.mrf.mxu0  ;;  %v309_v50 = vpop.f32.mrf.mxu1 }
  0xe7   :  { %1658 = vpow2.f32 %v1490_v40  ;;  %v1492_v44 = vmul.f32 -1.442695, %v317_v41  ;;  %v320_v45 = vadd.f32 %v268_v42, %v28_v39  ;;  %v319_v57 = vadd.f32 %v309_v50, %v27_v53 }
  0xe8   :  { %v270_v47 = vpop.f32.mrf.mxu0  ;;  %v311_v52 = vpop.f32.mrf.mxu1 }
  0xe9   :  { %1660 = vpow2.f32 %v1492_v44  ;;  %v1491_v48 = vmul.f32 -1.442695, %v320_v45  ;;  %v321_v49 = vadd.f32 %v270_v47, %v29_v43  ;;  %v1494_v61 = vmul.f32 -1.442695, %v319_v57 }
  0xea   :  { %v313_v56 = vpop.f32.mrf.mxu1  ;;  %v322_v37 = vadd.f32 %v311_v52, %v30_v63 }
  0xeb   :  { %1662 = vpow2.f32 %v1491_v48  ;;  %v1493_v51 = vmul.f32 -1.442695, %v321_v49  ;;  %v323_v59 = vadd.f32 %v313_v56, %v31_v55 }
  0xed   :  { %1664 = vpow2.f32 %v1493_v51  ;;  %v1495_v34 = vmul.f32 -1.442695, %v323_v59 }
  0xee   :  { %1666 = vtanh.f32 %v318_v58 }
  0xf4   :  { %v1659_v60 = vpop.eup %1658 }
  0xf5   :  { %v330_v62 = vadd.f32 1.0, %v1659_v60 }
  0xf6   :  { %v1661_v32 = vpop.eup %1660 }
  0xf7   :  { %1668 = vrcp.f32 %v330_v62  ;;  %v342_v35 = vadd.f32 1.0, %v1661_v32  ;;  %v1496_v32 = vld [vmem:[%s2808_s0 + $0x40] sm:$0xff] }
  0xf8   :  { %v1663_v36 = vpop.eup %1662  ;;  %1670 = vpow2.f32 %v1494_v61 }
  0xf9   :  { %1672 = vrcp.f32 %v342_v35  ;;  %v331_v38 = vadd.f32 1.0, %v1663_v36  ;;  %v1497_v35 = vld [vmem:[%s2808_s0 + $0x48] sm:$0xff] }
  0xfa   :  { %v1665_v39 = vpop.eup %1664  ;;  %1674 = vpow2.f32 %v1495_v34 }
  0xfb   :  { %1676 = vrcp.f32 %v331_v38  ;;  %v343_v40 = vadd.f32 1.0, %v1665_v39  ;;  %v1667_v41 = vpop.eup %1666  ;;  %v1500_v39 = vld [vmem:[%s2808_s0 + $0x60] sm:$0xff] }
  0xfc   :  { %1678 = vtanh.f32 %v322_v37 }
  0xfd   :  { %1680 = vrcp.f32 %v343_v40 }
 0x104   :  { %v1669_v42 = vpop.eup %1668 }
 0x105   :  { %v1671_v43 = vpop.eup %1670  ;;  %v364_v47 = vmul.f32 %v1669_v42, %v1667_v41 }
 0x106   :  { %v1673_v44 = vpop.eup %1672  ;;  %v356_v49 = vadd.f32 1.0, %v1671_v43  ;;  %v1501_v43 = vld [vmem:[%s2808_s0 + $0x68] sm:$0xff] }
 0x107   :  { %v1675_v45 = vpop.eup %1674  ;;  %v362_v46 = vmul.f32 0.0, %v1673_v44 }
 0x108   :  { %v1677_v48 = vpop.eup %1676  ;;  %v357_v53 = vadd.f32 1.0, %v1675_v45  ;;  %1682 = vrcp.f32 %v356_v49 }
 0x109   :  { %v1679_v50 = vpop.eup %1678  ;;  %v2218_v51 = vadd.f32 %v364_v47, %v362_v46 }
 0x10a   :  { %v1681_v52 = vpop.eup %1680  ;;  %v365_v55 = vmul.f32 %v1679_v50, %v1677_v48 }
 0x10b   :  { %v363_v54 = vmul.f32 0.0, %v1681_v52  ;;  %1684 = vtanh.f32 %v2218_v51 }
 0x10c   :  { %1686 = vrcp.f32 %v357_v53  ;;  %v1499_v53 = vld [vmem:[%s2808_s0 + $0x58] sm:$0xff] }
 0x10d   :  { %v2221_v56 = vadd.f32 %v365_v55, %v363_v54  ;;  %v1498_v54 = vld [vmem:[%s2808_s0 + $0x50] sm:$0xff]  ;;  %v1503_v55 = vld [vmem:[%s2808_s0 + $0x78] sm:$0xff] }
 0x10f   :  { %1688 = vtanh.f32 %v2221_v56 }
 0x115   :  { %v1683_v57 = vpop.eup %1682 }
 0x118   :  { %v1685_v58 = vpop.eup %1684 }
 0x119   :  { %v1687_v59 = vpop.eup %1686  ;;  %v370_v61 = vmul.f32 %v1685_v58, %v1683_v57 }
 0x11c   :  { %v1689_v60 = vpop.eup %1688 }
 0x11d   :  { %v371_v62 = vmul.f32 %v1689_v60, %v1687_v59 }
 0x11f   :  { %v372_v63 = vpack.c.bf16 %v371_v62, %v370_v61 }
 0x121   :  { %415 = vmatmul.mubr.bf16.vlgmr.msra.gmra.mxu0 %v372_v63  ;;  %458 = vmatmul.mubr.bf16.vlgmr.msra.gmra.mxu1 %v372_v63 }
 0x122   :  { %535 = vmatpush1.bf16.msra.mxu0 %v1974_v2  ;;  %578 = vmatpush1.bf16.msra.mxu1 %v2002_v7 }
 0x123   :  { %536 = vmatprep.subr.bf16.mxu0 %v1980_v3  ;;  %579 = vmatprep.subr.bf16.mxu1 %v2021_v10 }
 0x124   :  { %566 = vmatprep.mubr.bf16.mxu0 %v1946_v1  ;;  %609 = vmatprep.mubr.bf16.mxu1 %v1946_v1 }
 0x126   :  { %537 = vmatpush1.bf16.msra.mxu0 %v1986_v4  ;;  %580 = vmatpush1.bf16.msra.mxu1 %v2026_v11 }
 0x127   :  { %538 = vmatprep.subr.bf16.mxu0 %v1992_v5  ;;  %581 = vmatprep.subr.bf16.mxu1 %v2043_v14 }
 0x12a   :  { %539 = vmatpush1.bf16.msra.mxu0 %v2008_v8  ;;  %582 = vmatpush1.bf16.msra.mxu1 %v2050_v15 }
 0x12b   :  { %540 = vmatprep.subr.bf16.mxu0 %v2015_v9  ;;  %583 = vmatprep.subr.bf16.mxu1 %v2056_v16 }
 0x12e   :  { %541 = vmatpush1.bf16.msra.mxu0 %v2033_v12  ;;  %584 = vmatpush1.bf16.msra.mxu1 %v2074_v19 }
 0x12f   :  { %542 = vmatprep.subr.bf16.mxu0 %v2038_v13  ;;  %585 = vmatprep.subr.bf16.mxu1 %v2080_v20 }
 0x132   :  { %543 = vmatpush1.bf16.msra.mxu0 %v2062_v17  ;;  %586 = vmatpush1.bf16.msra.mxu1 %v2098_v23 }
 0x133   :  { %544 = vmatprep.subr.bf16.mxu0 %v2068_v18  ;;  %587 = vmatprep.subr.bf16.mxu1 %v2104_v24 }
 0x136   :  { %545 = vmatpush1.bf16.msra.mxu0 %v2086_v21  ;;  %588 = vmatpush1.bf16.msra.mxu1 %v2122_v27 }
 0x137   :  { %546 = vmatprep.subr.bf16.mxu0 %v2092_v22  ;;  %589 = vmatprep.subr.bf16.mxu1 %v2128_v28 }
 0x13a   :  { %547 = vmatpush1.bf16.msra.mxu0 %v2110_v25  ;;  %590 = vmatpush1.bf16.msra.mxu1 %v2141_v30 }
 0x13b   :  { %548 = vmatprep.subr.bf16.mxu0 %v2116_v26  ;;  %591 = vmatprep.subr.bf16.mxu1 %v2147_v31 }
 0x13e   :  { %549 = vmatpush1.bf16.msra.mxu0 %v2134_v29  ;;  %592 = vmatpush1.bf16.msra.mxu1 %v2154_v33 }
 0x13f   :  { %686 = vmatprep.subr.bf16.mxu0 %v1965_v0  ;;  %729 = vmatprep.subr.bf16.mxu1 %v1997_v6 }
 0x1e1   :  { %v416_v34 = vpop.f32.mrf.mxu0  ;;  %v459_v37 = vpop.f32.mrf.mxu1 }
 0x1e2   :  { %v468_v36 = vadd.f32 %v1496_v32, %v416_v34  ;;  %v470_v59 = vadd.f32 %v1498_v54, %v459_v37  ;;  %v1502_v32 = vld [vmem:[%s2808_s0 + $0x70] sm:$0xff] }
 0x1e3   :  { %v418_v38 = vpop.f32.mrf.mxu0  ;;  %v461_v45 = vpop.f32.mrf.mxu1 }
 0x1e4   :  { %v1504_v40 = vmul.f32 -1.442695, %v468_v36  ;;  %v469_v41 = vadd.f32 %v1497_v35, %v418_v38  ;;  %v471_v58 = vadd.f32 %v1499_v53, %v461_v45 }
 0x1e5   :  { %v420_v42 = vpop.f32.mrf.mxu0  ;;  %v463_v50 = vpop.f32.mrf.mxu1 }
 0x1e6   :  { %1690 = vpow2.f32 %v1504_v40  ;;  %v1506_v44 = vmul.f32 -1.442695, %v469_v41  ;;  %v472_v46 = vadd.f32 %v1500_v39, %v420_v42  ;;  %v1508_v62 = vmul.f32 -1.442695, %v471_v58 }
 0x1e7   :  { %v422_v47 = vpop.f32.mrf.mxu0  ;;  %v465_v57 = vpop.f32.mrf.mxu1  ;;  %v474_v39 = vadd.f32 %v1502_v32, %v463_v50 }
 0x1e8   :  { %1692 = vpow2.f32 %v1506_v44  ;;  %v1505_v48 = vmul.f32 -1.442695, %v472_v46  ;;  %v473_v49 = vadd.f32 %v1501_v43, %v422_v47  ;;  %v475_v60 = vadd.f32 %v1503_v55, %v465_v57 }
 0x1ea   :  { %1694 = vpow2.f32 %v1505_v48  ;;  %v1507_v52 = vmul.f32 -1.442695, %v473_v49  ;;  %v1509_v35 = vmul.f32 -1.442695, %v475_v60 }
 0x1ec   :  { %1696 = vpow2.f32 %v1507_v52 }
 0x1ed   :  { %1698 = vtanh.f32 %v470_v59 }
 0x1f3   :  { %v1691_v61 = vpop.eup %1690 }
 0x1f4   :  { %v482_v63 = vadd.f32 1.0, %v1691_v61 }
 0x1f5   :  { %v1693_v34 = vpop.eup %1692 }
 0x1f6   :  { %1700 = vrcp.f32 %v482_v63  ;;  %v494_v36 = vadd.f32 1.0, %v1693_v34 }
 0x1f7   :  { %v1695_v38 = vpop.eup %1694  ;;  %1702 = vpow2.f32 %v1508_v62 }
 0x1f8   :  { %1704 = vrcp.f32 %v494_v36  ;;  %v483_v40 = vadd.f32 1.0, %v1695_v38  ;;  %v1511_v36 = vld [vmem:[%s2808_s0 + $0x88] sm:$0xff] }
 0x1f9   :  { %v1697_v41 = vpop.eup %1696  ;;  %1706 = vpow2.f32 %v1509_v35 }
 0x1fa   :  { %1708 = vrcp.f32 %v483_v40  ;;  %v495_v37 = vadd.f32 1.0, %v1697_v41  ;;  %v1699_v42 = vpop.eup %1698  ;;  %v1514_v41 = vld [vmem:[%s2808_s0 + $0xa0] sm:$0xff] }
 0x1fb   :  { %1710 = vtanh.f32 %v474_v39 }
 0x1fc   :  { %1712 = vrcp.f32 %v495_v37 }
 0x203   :  { %v1701_v43 = vpop.eup %1700 }
 0x204   :  { %v1703_v44 = vpop.eup %1702  ;;  %v516_v47 = vmul.f32 %v1701_v43, %v1699_v42 }
 0x205   :  { %v1705_v45 = vpop.eup %1704  ;;  %v508_v52 = vadd.f32 1.0, %v1703_v44  ;;  %v1515_v44 = vld [vmem:[%s2808_s0 + $0xa8] sm:$0xff] }
 0x206   :  { %v1707_v46 = vpop.eup %1706  ;;  %v514_v48 = vmul.f32 %v1705_v45, %v2218_v51 }
 0x207   :  { %v1709_v49 = vpop.eup %1708  ;;  %v509_v55 = vadd.f32 1.0, %v1707_v46  ;;  %1714 = vrcp.f32 %v508_v52 }
 0x208   :  { %v1711_v53 = vpop.eup %1710  ;;  %v2283_v50 = vadd.f32 %v516_v47, %v514_v48 }
 0x209   :  { %v1713_v54 = vpop.eup %1712  ;;  %v517_v57 = vmul.f32 %v1711_v53, %v1709_v49 }
 0x20a   :  { %v515_v58 = vmul.f32 %v1713_v54, %v2221_v56  ;;  %1716 = vtanh.f32 %v2283_v50  ;;  %v1510_v56 = vld [vmem:[%s2808_s0 + $0x80] sm:$0xff] }
 0x20b   :  { %1718 = vrcp.f32 %v509_v55  ;;  %v1513_v55 = vld [vmem:[%s2808_s0 + $0x98] sm:$0xff] }
 0x20c   :  { %v2286_v59 = vadd.f32 %v517_v57, %v515_v58  ;;  %v1512_v57 = vld [vmem:[%s2808_s0 + $0x90] sm:$0xff]  ;;  %v1517_v58 = vld [vmem:[%s2808_s0 + $0xb8] sm:$0xff] }
 0x20e   :  { %1720 = vtanh.f32 %v2286_v59 }
 0x214   :  { %v1715_v60 = vpop.eup %1714 }
 0x217   :  { %v1717_v51 = vpop.eup %1716 }
 0x218   :  { %v1719_v61 = vpop.eup %1718  ;;  %v522_v63 = vmul.f32 %v1717_v51, %v1715_v60 }
 0x21b   :  { %v1721_v62 = vpop.eup %1720 }
 0x21c   :  { %v523_v32 = vmul.f32 %v1721_v62, %v1719_v61 }
 0x21e   :  { %v524_v34 = vpack.c.bf16 %v523_v32, %v522_v63 }
 0x220   :  { %567 = vmatmul.mubr.bf16.vlgmr.msra.gmra.mxu0 %v524_v34  ;;  %610 = vmatmul.mubr.bf16.vlgmr.msra.gmra.mxu1 %v524_v34 }
 0x221   :  { %687 = vmatpush1.bf16.msra.mxu0 %v1974_v2  ;;  %730 = vmatpush1.bf16.msra.mxu1 %v2002_v7 }
 0x222   :  { %688 = vmatprep.subr.bf16.mxu0 %v1980_v3  ;;  %731 = vmatprep.subr.bf16.mxu1 %v2021_v10 }
 0x223   :  { %718 = vmatprep.mubr.bf16.mxu0 %v1946_v1  ;;  %761 = vmatprep.mubr.bf16.mxu1 %v1946_v1 }
 0x225   :  { %689 = vmatpush1.bf16.msra.mxu0 %v1986_v4  ;;  %732 = vmatpush1.bf16.msra.mxu1 %v2026_v11 }
 0x226   :  { %690 = vmatprep.subr.bf16.mxu0 %v1992_v5  ;;  %733 = vmatprep.subr.bf16.mxu1 %v2043_v14 }
 0x229   :  { %691 = vmatpush1.bf16.msra.mxu0 %v2008_v8  ;;  %734 = vmatpush1.bf16.msra.mxu1 %v2050_v15 }
 0x22a   :  { %692 = vmatprep.subr.bf16.mxu0 %v2015_v9  ;;  %735 = vmatprep.subr.bf16.mxu1 %v2056_v16 }
 0x22d   :  { %693 = vmatpush1.bf16.msra.mxu0 %v2033_v12  ;;  %736 = vmatpush1.bf16.msra.mxu1 %v2074_v19 }
 0x22e   :  { %694 = vmatprep.subr.bf16.mxu0 %v2038_v13  ;;  %737 = vmatprep.subr.bf16.mxu1 %v2080_v20 }
 0x231   :  { %695 = vmatpush1.bf16.msra.mxu0 %v2062_v17  ;;  %738 = vmatpush1.bf16.msra.mxu1 %v2098_v23 }
 0x232   :  { %696 = vmatprep.subr.bf16.mxu0 %v2068_v18  ;;  %739 = vmatprep.subr.bf16.mxu1 %v2104_v24 }
 0x235   :  { %697 = vmatpush1.bf16.msra.mxu0 %v2086_v21  ;;  %740 = vmatpush1.bf16.msra.mxu1 %v2122_v27 }
 0x236   :  { %698 = vmatprep.subr.bf16.mxu0 %v2092_v22  ;;  %741 = vmatprep.subr.bf16.mxu1 %v2128_v28 }
 0x239   :  { %699 = vmatpush1.bf16.msra.mxu0 %v2110_v25  ;;  %742 = vmatpush1.bf16.msra.mxu1 %v2141_v30 }
 0x23a   :  { %700 = vmatprep.subr.bf16.mxu0 %v2116_v26  ;;  %743 = vmatprep.subr.bf16.mxu1 %v2147_v31 }
 0x23d   :  { %701 = vmatpush1.bf16.msra.mxu0 %v2134_v29  ;;  %744 = vmatpush1.bf16.msra.mxu1 %v2154_v33 }
 0x23e   :  { %838 = vmatprep.subr.bf16.mxu0 %v1965_v0  ;;  %881 = vmatprep.subr.bf16.mxu1 %v1997_v6 }
 0x2e0   :  { %v568_v35 = vpop.f32.mrf.mxu0  ;;  %v611_v39 = vpop.f32.mrf.mxu1 }
 0x2e1   :  { %v620_v38 = vadd.f32 %v1510_v56, %v568_v35  ;;  %v622_v61 = vadd.f32 %v1512_v57, %v611_v39  ;;  %v1516_v56 = vld [vmem:[%s2808_s0 + $0xb0] sm:$0xff] }
 0x2e2   :  { %v570_v40 = vpop.f32.mrf.mxu0  ;;  %v613_v46 = vpop.f32.mrf.mxu1 }
 0x2e3   :  { %v1518_v37 = vmul.f32 -1.442695, %v620_v38  ;;  %v621_v42 = vadd.f32 %v1511_v36, %v570_v40  ;;  %v623_v51 = vadd.f32 %v1513_v55, %v613_v46 }
 0x2e4   :  { %v572_v43 = vpop.f32.mrf.mxu0  ;;  %v615_v53 = vpop.f32.mrf.mxu1 }
 0x2e5   :  { %1722 = vpow2.f32 %v1518_v37  ;;  %v1520_v45 = vmul.f32 -1.442695, %v621_v42  ;;  %v624_v47 = vadd.f32 %v1514_v41, %v572_v43  ;;  %v1522_v32 = vmul.f32 -1.442695, %v623_v51 }
 0x2e6   :  { %v574_v48 = vpop.f32.mrf.mxu0  ;;  %v617_v60 = vpop.f32.mrf.mxu1  ;;  %v626_v41 = vadd.f32 %v1516_v56, %v615_v53 }
 0x2e7   :  { %1724 = vpow2.f32 %v1520_v45  ;;  %v1519_v49 = vmul.f32 -1.442695, %v624_v47  ;;  %v625_v52 = vadd.f32 %v1515_v44, %v574_v48  ;;  %v627_v62 = vadd.f32 %v1517_v58, %v617_v60 }
 0x2e9   :  { %1726 = vpow2.f32 %v1519_v49  ;;  %v1521_v54 = vmul.f32 -1.442695, %v625_v52  ;;  %v1523_v36 = vmul.f32 -1.442695, %v627_v62 }
 0x2eb   :  { %1728 = vpow2.f32 %v1521_v54 }
 0x2ec   :  { %1730 = vtanh.f32 %v622_v61 }
 0x2f2   :  { %v1723_v63 = vpop.eup %1722 }
 0x2f3   :  { %v634_v34 = vadd.f32 1.0, %v1723_v63 }
 0x2f4   :  { %v1725_v35 = vpop.eup %1724 }
 0x2f5   :  { %1732 = vrcp.f32 %v634_v34  ;;  %v646_v38 = vadd.f32 1.0, %v1725_v35 }
 0x2f6   :  { %v1727_v40 = vpop.eup %1726  ;;  %1734 = vpow2.f32 %v1522_v32 }
 0x2f7   :  { %1736 = vrcp.f32 %v646_v38  ;;  %v635_v37 = vadd.f32 1.0, %v1727_v40 }
 0x2f8   :  { %v1729_v42 = vpop.eup %1728  ;;  %1738 = vpow2.f32 %v1523_v36  ;;  %v1531_v36 = vld [vmem:[%s2808_s0 + $0xf8] sm:$0xff] }
 0x2f9   :  { %1740 = vrcp.f32 %v635_v37  ;;  %v647_v39 = vadd.f32 1.0, %v1729_v42  ;;  %v1731_v43 = vpop.eup %1730 }
 0x2fa   :  { %1742 = vtanh.f32 %v626_v41 }
 0x2fb   :  { %1744 = vrcp.f32 %v647_v39 }
 0x302   :  { %v1733_v44 = vpop.eup %1732 }
 0x303   :  { %v1735_v45 = vpop.eup %1734  ;;  %v668_v48 = vmul.f32 %v1733_v44, %v1731_v43  ;;  %v1530_v44 = vld [vmem:[%s2808_s0 + $0xf0] sm:$0xff] }
 0x304   :  { %v1737_v46 = vpop.eup %1736  ;;  %v660_v54 = vadd.f32 1.0, %v1735_v45 }
 0x305   :  { %v1739_v47 = vpop.eup %1738  ;;  %v666_v49 = vmul.f32 %v1737_v46, %v2283_v50 }
 0x306   :  { %v1741_v52 = vpop.eup %1740  ;;  %v661_v58 = vadd.f32 1.0, %v1739_v47  ;;  %1746 = vrcp.f32 %v660_v54 }
 0x307   :  { %v1743_v55 = vpop.eup %1742  ;;  %v2349_v53 = vadd.f32 %v668_v48, %v666_v49 }
 0x308   :  { %v1745_v57 = vpop.eup %1744  ;;  %v669_v60 = vmul.f32 %v1743_v55, %v1741_v52 }
 0x309   :  { %v667_v51 = vmul.f32 %v1745_v57, %v2286_v59  ;;  %1748 = vtanh.f32 %v2349_v53  ;;  %v1526_v59 = vld [vmem:[%s2808_s0 + $0xd0] sm:$0xff] }
 0x30a   :  { %1750 = vrcp.f32 %v661_v58 }
 0x30b   :  { %v2352_v61 = vadd.f32 %v669_v60, %v667_v51 }
 0x30d   :  { %1752 = vtanh.f32 %v2352_v61 }
 0x313   :  { %v1747_v62 = vpop.eup %1746 }
 0x316   :  { %v1749_v50 = vpop.eup %1748 }
 0x317   :  { %v1751_v63 = vpop.eup %1750  ;;  %v674_v34 = vmul.f32 %v1749_v50, %v1747_v62 }
 0x31a   :  { %v1753_v32 = vpop.eup %1752 }
 0x31b   :  { %v675_v56 = vmul.f32 %v1753_v32, %v1751_v63 }
 0x31d   :  { %v676_v35 = vpack.c.bf16 %v675_v56, %v674_v34 }
 0x31f   :  { %719 = vmatmul.mubr.bf16.vlgmr.msra.gmra.mxu0 %v676_v35  ;;  %762 = vmatmul.mubr.bf16.vlgmr.msra.gmra.mxu1 %v676_v35 }
 0x320   :  { %839 = vmatpush1.bf16.msra.mxu0 %v1974_v2  ;;  %882 = vmatpush1.bf16.msra.mxu1 %v2002_v7  ;;  %v1524_v2 = vld [vmem:[%s2808_s0 + $0xc0] sm:$0xff] }
 0x321   :  { %840 = vmatprep.subr.bf16.mxu0 %v1980_v3  ;;  %883 = vmatprep.subr.bf16.mxu1 %v2021_v10 }
 0x322   :  { %870 = vmatprep.mubr.bf16.mxu0 %v1946_v1  ;;  %913 = vmatprep.mubr.bf16.mxu1 %v1946_v1 }
 0x324   :  { %841 = vmatpush1.bf16.msra.mxu0 %v1986_v4  ;;  %884 = vmatpush1.bf16.msra.mxu1 %v2026_v11  ;;  %v1525_v4 = vld [vmem:[%s2808_s0 + $0xc8] sm:$0xff] }
 0x325   :  { %842 = vmatprep.subr.bf16.mxu0 %v1992_v5  ;;  %885 = vmatprep.subr.bf16.mxu1 %v2043_v14 }
 0x328   :  { %843 = vmatpush1.bf16.msra.mxu0 %v2008_v8  ;;  %886 = vmatpush1.bf16.msra.mxu1 %v2050_v15 }
 0x329   :  { %844 = vmatprep.subr.bf16.mxu0 %v2015_v9  ;;  %887 = vmatprep.subr.bf16.mxu1 %v2056_v16  ;;  %v1528_v9 = vld [vmem:[%s2808_s0 + $0xe0] sm:$0xff] }
 0x32c   :  { %845 = vmatpush1.bf16.msra.mxu0 %v2033_v12  ;;  %888 = vmatpush1.bf16.msra.mxu1 %v2074_v19 }
 0x32d   :  { %846 = vmatprep.subr.bf16.mxu0 %v2038_v13  ;;  %889 = vmatprep.subr.bf16.mxu1 %v2080_v20  ;;  %v1527_v20 = vld [vmem:[%s2808_s0 + $0xd8] sm:$0xff] }
 0x330   :  { %847 = vmatpush1.bf16.msra.mxu0 %v2062_v17  ;;  %890 = vmatpush1.bf16.msra.mxu1 %v2098_v23 }
 0x331   :  { %848 = vmatprep.subr.bf16.mxu0 %v2068_v18  ;;  %891 = vmatprep.subr.bf16.mxu1 %v2104_v24 }
 0x334   :  { %849 = vmatpush1.bf16.msra.mxu0 %v2086_v21  ;;  %892 = vmatpush1.bf16.msra.mxu1 %v2122_v27 }
 0x335   :  { %850 = vmatprep.subr.bf16.mxu0 %v2092_v22  ;;  %893 = vmatprep.subr.bf16.mxu1 %v2128_v28 }
 0x338   :  { %851 = vmatpush1.bf16.msra.mxu0 %v2110_v25  ;;  %894 = vmatpush1.bf16.msra.mxu1 %v2141_v30 }
 0x339   :  { %852 = vmatprep.subr.bf16.mxu0 %v2116_v26  ;;  %895 = vmatprep.subr.bf16.mxu1 %v2147_v31 }
 0x33c   :  { %853 = vmatpush1.bf16.msra.mxu0 %v2134_v29  ;;  %896 = vmatpush1.bf16.msra.mxu1 %v2154_v33 }
 0x33d   :  { %990 = vmatprep.subr.bf16.mxu0 %v1965_v0  ;;  %1033 = vmatprep.subr.bf16.mxu1 %v1997_v6  ;;  %v1529_v6 = vld [vmem:[%s2808_s0 + $0xe8] sm:$0xff] }
 0x3df   :  { %v720_v3 = vpop.f32.mrf.mxu0  ;;  %v763_v7 = vpop.f32.mrf.mxu1 }
 0x3e0   :  { %v772_v5 = vadd.f32 %v1524_v2, %v720_v3  ;;  %v774_v41 = vadd.f32 %v1526_v59, %v763_v7  ;;  %v2487_v59 = vld [vmem:[%s2807_s1 + $0x84] ss:$16 sps:$4 sm:$0xff]  }
 0x3e1   :  { %v722_v8 = vpop.f32.mrf.mxu0  ;;  %v765_v13 = vpop.f32.mrf.mxu1 }
 0x3e2   :  { %v1532_v10 = vmul.f32 -1.442695, %v772_v5  ;;  %v773_v0 = vadd.f32 %v1525_v4, %v722_v8  ;;  %v775_v40 = vadd.f32 %v1527_v20, %v765_v13  ;;  %v2437_v13 = vld [vmem:[%s2807_s1 + $0xc4] ss:$16 sps:$4 sm:$0xff]   ;;  %v2481_v20 = vld [vmem:[%s2807_s1 + $0xa8] ss:$16 sps:$4 sm:$0xff]  }
 0x3e3   :  { %v724_v11 = vpop.f32.mrf.mxu0  ;;  %v767_v18 = vpop.f32.mrf.mxu1 }
 0x3e4   :  { %1754 = vpow2.f32 %v1532_v10  ;;  %v1534_v12 = vmul.f32 -1.442695, %v773_v0  ;;  %v776_v14 = vadd.f32 %v1528_v9, %v724_v11  ;;  %v1536_v39 = vmul.f32 -1.442695, %v775_v40  ;;  %v2505_v40 = vld [vmem:[%s2807_s1 + $0x88] ss:$16 sps:$4 sm:$0xff]  }
 0x3e5   :  { %v726_v15 = vpop.f32.mrf.mxu0  ;;  %v769_v38 = vpop.f32.mrf.mxu1  ;;  %v778_v49 = vadd.f32 %v1530_v44, %v767_v18  ;;  %v2469_v18 = vld [vmem:[%s2807_s1 + $0xac] ss:$16 sps:$4 sm:$0xff]  }
 0x3e6   :  { %1756 = vpow2.f32 %v1534_v12  ;;  %v1533_v16 = vmul.f32 -1.442695, %v776_v14  ;;  %v777_v17 = vadd.f32 %v1529_v6, %v726_v15  ;;  %v779_v37 = vadd.f32 %v1531_v36, %v769_v38  ;;  %v2431_v12 = vld [vmem:[%s2807_s1 + $0xe8] ss:$16 sps:$4 sm:$0xff]   ;;  %v2443_v14 = vld [vmem:[%s2807_s1 + $0xcc] ss:$16 sps:$4 sm:$0xff]  }
 0x3e7   :  { %v2451_v15 = vld [vmem:[%s2807_s1 + $0xc0] ss:$16 sps:$4 sm:$0xff]   ;;  %v2493_v36 = vld [vmem:[%s2807_s1 + $0x8c] ss:$16 sps:$4 sm:$0xff]  }
 0x3e8   :  { %1758 = vpow2.f32 %v1533_v16  ;;  %v1535_v19 = vmul.f32 -1.442695, %v777_v17  ;;  %v1537_v46 = vmul.f32 -1.442695, %v779_v37  ;;  %v2457_v16 = vld [vmem:[%s2807_s1 + $0xc8] ss:$16 sps:$4 sm:$0xff]  }
 0x3e9   :  { %v2463_v17 = vld [vmem:[%s2807_s1 + $0xa4] ss:$16 sps:$4 sm:$0xff]   ;;  %v2499_v38 = vld [vmem:[%s2807_s1 + $0x80] ss:$16 sps:$4 sm:$0xff]   ;;  %v2517_v37 = vld [vmem:[%s2807_s1 + $0x6c] ss:$16 sps:$4 sm:$0xff]  }
 0x3ea   :  { %1760 = vpow2.f32 %v1535_v19  ;;  %v2475_v19 = vld [vmem:[%s2807_s1 + $0xa0] ss:$16 sps:$4 sm:$0xff]  }
 0x3eb   :  { %1762 = vtanh.f32 %v774_v41  ;;  %v2511_v41 = vld [vmem:[%s2807_s1 + $0x64] ss:$16 sps:$4 sm:$0xff]  }
 0x3f1   :  { %v1755_v42 = vpop.eup %1754 }
 0x3f2   :  { %v786_v43 = vadd.f32 1.0, %v1755_v42  ;;  %v2523_v42 = vld [vmem:[%s2807_s1 + $0x60] ss:$16 sps:$4 sm:$0xff]  }
 0x3f3   :  { %v1757_v45 = vpop.eup %1756 }
 0x3f4   :  { %1764 = vrcp.f32 %v786_v43  ;;  %v798_v47 = vadd.f32 1.0, %v1757_v45  ;;  %v1543_v43 = vld [vmem:[%s2808_s0 + $0x128] sm:$0xff] }
 0x3f5   :  { %v1759_v48 = vpop.eup %1758  ;;  %1766 = vpow2.f32 %v1536_v39  ;;  %v2530_v39 = vld [vmem:[%s2807_s1 + $0x44] ss:$16 sps:$4 sm:$0xff]  }
 0x3f6   :  { %1768 = vrcp.f32 %v798_v47  ;;  %v787_v52 = vadd.f32 1.0, %v1759_v48 }
 0x3f7   :  { %v1761_v54 = vpop.eup %1760  ;;  %1770 = vpow2.f32 %v1537_v46 }
 0x3f8   :  { %1772 = vrcp.f32 %v787_v52  ;;  %v799_v55 = vadd.f32 1.0, %v1761_v54  ;;  %v1763_v57 = vpop.eup %1762 }
 0x3f9   :  { %1774 = vtanh.f32 %v778_v49 }
 0x3fa   :  { %1776 = vrcp.f32 %v799_v55  ;;  %v1541_v55 = vld [vmem:[%s2808_s0 + $0x118] sm:$0xff] }
 0x401   :  { %v1765_v58 = vpop.eup %1764 }
 0x402   :  { %v1767_v60 = vpop.eup %1766  ;;  %v820_v50 = vmul.f32 %v1765_v58, %v1763_v57  ;;  %v1540_v57 = vld [vmem:[%s2808_s0 + $0x110] sm:$0xff]  ;;  %v1545_v58 = vld [vmem:[%s2808_s0 + $0x138] sm:$0xff] }
 0x403   :  { %v1769_v51 = vpop.eup %1768  ;;  %v812_v34 = vadd.f32 1.0, %v1767_v60 }
 0x404   :  { %v1771_v62 = vpop.eup %1770  ;;  %v818_v63 = vmul.f32 %v1769_v51, %v2349_v53 }
 0x405   :  { %v1773_v32 = vpop.eup %1772  ;;  %v813_v3 = vadd.f32 1.0, %v1771_v62  ;;  %1778 = vrcp.f32 %v812_v34 }
 0x406   :  { %v1775_v56 = vpop.eup %1774  ;;  %v2415_v35 = vadd.f32 %v820_v50, %v818_v63 }
 0x407   :  { %v1777_v2 = vpop.eup %1776  ;;  %v821_v4 = vmul.f32 %v1775_v56, %v1773_v32  ;;  %v1544_v56 = vld [vmem:[%s2808_s0 + $0x130] sm:$0xff] }
 0x408   :  { %v819_v5 = vmul.f32 %v1777_v2, %v2352_v61  ;;  %1780 = vtanh.f32 %v2415_v35  ;;  %v2425_v61 = vld [vmem:[%s2807_s1 + $0xe0] ss:$16 sps:$4 sm:$0xff]  }
 0x409   :  { %1782 = vrcp.f32 %v813_v3 }
 0x40a   :  { %v2418_v7 = vadd.f32 %v821_v4, %v819_v5 }
 0x40c   :  { %1784 = vtanh.f32 %v2418_v7 }
 0x412   :  { %v1779_v8 = vpop.eup %1778 }
 0x415   :  { %v1781_v53 = vpop.eup %1780 }
 0x416   :  { %v1783_v9 = vpop.eup %1782  ;;  %v826_v0 = vmul.f32 %v1781_v53, %v1779_v8 }
 0x419   :  { %v1785_v10 = vpop.eup %1784 }
 0x41a   :  { %v827_v11 = vmul.f32 %v1785_v10, %v1783_v9 }
 0x41c   :  { %v828_v6 = vpack.c.bf16 %v827_v11, %v826_v0 }
 0x41e   :  { %871 = vmatmul.mubr.bf16.vlgmr.msra.gmra.mxu0 %v828_v6  ;;  %914 = vmatmul.mubr.bf16.vlgmr.msra.gmra.mxu1 %v828_v6 }
 0x41f   :  { %991 = vmatpush1.bf16.msra.mxu0 %v2425_v61  ;;  %1034 = vmatpush1.bf16.msra.mxu1 %v2431_v12 }
 0x420   :  { %992 = vmatprep.subr.bf16.mxu0 %v2437_v13  ;;  %1035 = vmatprep.subr.bf16.mxu1 %v2443_v14 }
 0x421   :  { %1022 = vmatprep.mubr.bf16.mxu0 %v1946_v1  ;;  %1065 = vmatprep.mubr.bf16.mxu1 %v1946_v1 }
 0x423   :  { %993 = vmatpush1.bf16.msra.mxu0 %v2451_v15  ;;  %1036 = vmatpush1.bf16.msra.mxu1 %v2457_v16 }
 0x424   :  { %994 = vmatprep.subr.bf16.mxu0 %v2463_v17  ;;  %1037 = vmatprep.subr.bf16.mxu1 %v2469_v18 }
 0x427   :  { %995 = vmatpush1.bf16.msra.mxu0 %v2475_v19  ;;  %1038 = vmatpush1.bf16.msra.mxu1 %v2481_v20 }
 0x428   :  { %996 = vmatprep.subr.bf16.mxu0 %v2487_v59  ;;  %1039 = vmatprep.subr.bf16.mxu1 %v2493_v36 }
 0x42b   :  { %997 = vmatpush1.bf16.msra.mxu0 %v2499_v38  ;;  %1040 = vmatpush1.bf16.msra.mxu1 %v2505_v40 }
 0x42c   :  { %998 = vmatprep.subr.bf16.mxu0 %v2511_v41  ;;  %1041 = vmatprep.subr.bf16.mxu1 %v2517_v37 }
 0x42f   :  { %999 = vmatpush1.bf16.msra.mxu0 %v2523_v42  ;;  %1042 = vmatpush1.bf16.msra.mxu1 %v2098_v23  ;;  %v1538_v23 = vld [vmem:[%s2808_s0 + $0x100] sm:$0xff] }
 0x430   :  { %1000 = vmatprep.subr.bf16.mxu0 %v2530_v39  ;;  %1043 = vmatprep.subr.bf16.mxu1 %v2104_v24 }
 0x433   :  { %1001 = vmatpush1.bf16.msra.mxu0 %v2086_v21  ;;  %1044 = vmatpush1.bf16.msra.mxu1 %v2122_v27  ;;  %v2547_v21 = vld [vmem:[%s2807_s1 + $0xe4] ss:$16 sps:$4 sm:$0xff]  }
 0x434   :  { %1002 = vmatprep.subr.bf16.mxu0 %v2092_v22  ;;  %1045 = vmatprep.subr.bf16.mxu1 %v2128_v28  ;;  %v2553_v22 = vld [vmem:[%s2807_s1 + $0xec] ss:$16 sps:$4 sm:$0xff]  }
 0x437   :  { %1003 = vmatpush1.bf16.msra.mxu0 %v2110_v25  ;;  %1046 = vmatpush1.bf16.msra.mxu1 %v2141_v30  ;;  %v1539_v25 = vld [vmem:[%s2808_s0 + $0x108] sm:$0xff] }
 0x438   :  { %1004 = vmatprep.subr.bf16.mxu0 %v2116_v26  ;;  %1047 = vmatprep.subr.bf16.mxu1 %v2147_v31 }
 0x43b   :  { %1005 = vmatpush1.bf16.msra.mxu0 %v2134_v29  ;;  %1048 = vmatpush1.bf16.msra.mxu1 %v2154_v33  ;;  %v1542_v29 = vld [vmem:[%s2808_s0 + $0x120] sm:$0xff] }
 0x43c   :  { %1142 = vmatprep.subr.bf16.mxu0 %v2547_v21  ;;  %1185 = vmatprep.subr.bf16.mxu1 %v2553_v22 }
 0x4de   :  { %v872_v24 = vpop.f32.mrf.mxu0  ;;  %v915_v27 = vpop.f32.mrf.mxu1 }
 0x4df   :  { %v924_v26 = vadd.f32 %v1538_v23, %v872_v24  ;;  %v926_v62 = vadd.f32 %v1540_v57, %v915_v27  ;;  %v2623_v57 = vld [vmem:[%s2807_s1 + $0x40] ss:$16 sps:$4 sm:$0xff]  }
 0x4e0   :  { %v874_v28 = vpop.f32.mrf.mxu0  ;;  %v917_v45 = vpop.f32.mrf.mxu1 }
 0x4e1   :  { %v1546_v30 = vmul.f32 -1.442695, %v924_v26  ;;  %v925_v31 = vadd.f32 %v1539_v25, %v874_v28  ;;  %v927_v51 = vadd.f32 %v1541_v55, %v917_v45  ;;  %v2617_v55 = vld [vmem:[%s2807_s1 + $0x4c] ss:$16 sps:$4 sm:$0xff]  }
 0x4e2   :  { %v876_v33 = vpop.f32.mrf.mxu0  ;;  %v919_v52 = vpop.f32.mrf.mxu1 }
 0x4e3   :  { %1786 = vpow2.f32 %v1546_v30  ;;  %v1548_v44 = vmul.f32 -1.442695, %v925_v31  ;;  %v928_v46 = vadd.f32 %v1542_v29, %v876_v33  ;;  %v1550_v32 = vmul.f32 -1.442695, %v927_v51  ;;  %v2641_v51 = vld [vmem:[%s2807_s1 + $0x2c] ss:$16 sps:$4 sm:$0xff]  }
 0x4e4   :  { %v878_v47 = vpop.f32.mrf.mxu0  ;;  %v921_v60 = vpop.f32.mrf.mxu1  ;;  %v930_v8 = vadd.f32 %v1544_v56, %v919_v52  ;;  %v2677_v56 = vld [vmem:[%s2807_s1 + $0x8] ss:$16 sps:$4 sm:$0xff]  }
 0x4e5   :  { %1788 = vpow2.f32 %v1548_v44  ;;  %v1547_v48 = vmul.f32 -1.442695, %v928_v46  ;;  %v929_v49 = vadd.f32 %v1543_v43, %v878_v47  ;;  %v931_v50 = vadd.f32 %v1545_v58, %v921_v60  ;;  %v2629_v58 = vld [vmem:[%s2807_s1 + $0x48] ss:$16 sps:$4 sm:$0xff]   ;;  %v2635_v60 = vld [vmem:[%s2807_s1 + $0x24] ss:$16 sps:$4 sm:$0xff]  }
 0x4e7   :  { %1790 = vpow2.f32 %v1547_v48  ;;  %v1549_v54 = vmul.f32 -1.442695, %v929_v49  ;;  %v1551_v3 = vmul.f32 -1.442695, %v931_v50  ;;  %v2653_v50 = vld [vmem:[%s2807_s1 + $0x28] ss:$16 sps:$4 sm:$0xff]  }
 0x4e9   :  { %1792 = vpow2.f32 %v1549_v54 }
 0x4ea   :  { %1794 = vtanh.f32 %v926_v62  ;;  %v2647_v62 = vld [vmem:[%s2807_s1 + $0x20] ss:$16 sps:$4 sm:$0xff]  }
 0x4f0   :  { %v1787_v63 = vpop.eup %1786 }
 0x4f1   :  { %v938_v34 = vadd.f32 1.0, %v1787_v63  ;;  %v2659_v63 = vld [vmem:[%s2807_s1 + $0x4] ss:$16 sps:$4 sm:$0xff]  }
 0x4f2   :  { %v1789_v2 = vpop.eup %1788 }
 0x4f3   :  { %1796 = vrcp.f32 %v938_v34  ;;  %v950_v4 = vadd.f32 1.0, %v1789_v2  ;;  %v2671_v34 = vld [vmem:[%s2807_s1] ss:$16 sps:$4 sm:$0xff]  }
 0x4f4   :  { %v1791_v5 = vpop.eup %1790  ;;  %1798 = vpow2.f32 %v1550_v32  ;;  %v2665_v32 = vld [vmem:[%s2807_s1 + $0xc] ss:$16 sps:$4 sm:$0xff]   ;;  %v1552_v2 = vld [vmem:[%s2808_s0 + $0x140] sm:$0xff] }
 0x4f5   :  { %1800 = vrcp.f32 %v950_v4  ;;  %v939_v53 = vadd.f32 1.0, %v1791_v5  ;;  %v1553_v4 = vld [vmem:[%s2808_s0 + $0x148] sm:$0xff] }
 0x4f6   :  { %v1793_v9 = vpop.eup %1792  ;;  %1802 = vpow2.f32 %v1551_v3 }
 0x4f7   :  { %1804 = vrcp.f32 %v939_v53  ;;  %v951_v10 = vadd.f32 1.0, %v1793_v9  ;;  %v1795_v0 = vpop.eup %1794  ;;  %v1556_v9 = vld [vmem:[%s2808_s0 + $0x160] sm:$0xff] }
 0x4f8   :  { %1806 = vtanh.f32 %v930_v8 }
 0x4f9   :  { %1808 = vrcp.f32 %v951_v10 }
 0x500   :  { %v1797_v11 = vpop.eup %1796 }
 0x501   :  { %v1799_v6 = vpop.eup %1798  ;;  %v972_v25 = vmul.f32 %v1797_v11, %v1795_v0 }
 0x502   :  { %v1801_v23 = vpop.eup %1800  ;;  %v964_v28 = vadd.f32 1.0, %v1799_v6 }
 0x503   :  { %v1803_v24 = vpop.eup %1802  ;;  %v970_v26 = vmul.f32 %v1801_v23, %v2415_v35 }
 0x504   :  { %v1805_v27 = vpop.eup %1804  ;;  %v965_v33 = vadd.f32 1.0, %v1803_v24  ;;  %1810 = vrcp.f32 %v964_v28 }
 0x505   :  { %v1807_v29 = vpop.eup %1806  ;;  %v2581_v30 = vadd.f32 %v972_v25, %v970_v26 }
 0x506   :  { %v1809_v31 = vpop.eup %1808  ;;  %v973_v43 = vmul.f32 %v1807_v29, %v1805_v27  ;;  %v1555_v29 = vld [vmem:[%s2808_s0 + $0x158] sm:$0xff] }
 0x507   :  { %v971_v44 = vmul.f32 %v1809_v31, %v2418_v7  ;;  %1812 = vtanh.f32 %v2581_v30  ;;  %v2610_v7 = vld [vmem:[%s2807_s1 + $0x68] ss:$16 sps:$4 sm:$0xff]   ;;  %v1554_v31 = vld [vmem:[%s2808_s0 + $0x150] sm:$0xff] }
 0x508   :  { %1814 = vrcp.f32 %v965_v33  ;;  %v1559_v33 = vld [vmem:[%s2808_s0 + $0x178] sm:$0xff] }
 0x509   :  { %v2584_v45 = vadd.f32 %v973_v43, %v971_v44 }
 0x50b   :  { %1816 = vtanh.f32 %v2584_v45 }
 0x511   :  { %v1811_v46 = vpop.eup %1810 }
 0x514   :  { %v1813_v35 = vpop.eup %1812 }
 0x515   :  { %v1815_v47 = vpop.eup %1814  ;;  %v978_v49 = vmul.f32 %v1813_v35, %v1811_v46 }
 0x518   :  { %v1817_v48 = vpop.eup %1816 }
 0x519   :  { %v979_v52 = vmul.f32 %v1817_v48, %v1815_v47 }
 0x51b   :  { %v980_v54 = vpack.c.bf16 %v979_v52, %v978_v49  ;;  %v1558_v52 = vld [vmem:[%s2808_s0 + $0x170] sm:$0xff] }
 0x51d   :  { %1023 = vmatmul.mubr.bf16.vlgmr.msra.gmra.mxu0 %v980_v54  ;;  %1066 = vmatmul.mubr.bf16.vlgmr.msra.gmra.mxu1 %v980_v54 }
 0x51e   :  { %1143 = vmatpush1.bf16.msra.mxu0 %v2425_v61  ;;  %1186 = vmatpush1.bf16.msra.mxu1 %v2431_v12 }
 0x51f   :  { %1144 = vmatprep.subr.bf16.mxu0 %v2437_v13  ;;  %1187 = vmatprep.subr.bf16.mxu1 %v2443_v14 }
 0x520   :  { %1174 = vmatprep.mubr.bf16.mxu0 %v1946_v1  ;;  %1217 = vmatprep.mubr.bf16.mxu1 %v1946_v1 }
 0x522   :  { %1145 = vmatpush1.bf16.msra.mxu0 %v2451_v15  ;;  %1188 = vmatpush1.bf16.msra.mxu1 %v2457_v16 }
 0x523   :  { %1146 = vmatprep.subr.bf16.mxu0 %v2463_v17  ;;  %1189 = vmatprep.subr.bf16.mxu1 %v2469_v18 }
 0x526   :  { %1147 = vmatpush1.bf16.msra.mxu0 %v2475_v19  ;;  %1190 = vmatpush1.bf16.msra.mxu1 %v2481_v20 }
 0x527   :  { %1148 = vmatprep.subr.bf16.mxu0 %v2487_v59  ;;  %1191 = vmatprep.subr.bf16.mxu1 %v2493_v36 }
 0x52a   :  { %1149 = vmatpush1.bf16.msra.mxu0 %v2499_v38  ;;  %1192 = vmatpush1.bf16.msra.mxu1 %v2505_v40 }
 0x52b   :  { %1150 = vmatprep.subr.bf16.mxu0 %v2511_v41  ;;  %1193 = vmatprep.subr.bf16.mxu1 %v2517_v37 }
 0x52e   :  { %1151 = vmatpush1.bf16.msra.mxu0 %v2523_v42  ;;  %1194 = vmatpush1.bf16.msra.mxu1 %v2610_v7 }
 0x52f   :  { %1152 = vmatprep.subr.bf16.mxu0 %v2530_v39  ;;  %1195 = vmatprep.subr.bf16.mxu1 %v2617_v55 }
 0x532   :  { %1153 = vmatpush1.bf16.msra.mxu0 %v2623_v57  ;;  %1196 = vmatpush1.bf16.msra.mxu1 %v2629_v58 }
 0x533   :  { %1154 = vmatprep.subr.bf16.mxu0 %v2635_v60  ;;  %1197 = vmatprep.subr.bf16.mxu1 %v2641_v51 }
 0x536   :  { %1155 = vmatpush1.bf16.msra.mxu0 %v2647_v62  ;;  %1198 = vmatpush1.bf16.msra.mxu1 %v2653_v50 }
 0x537   :  { %1156 = vmatprep.subr.bf16.mxu0 %v2659_v63  ;;  %1199 = vmatprep.subr.bf16.mxu1 %v2665_v32 }
 0x53a   :  { %1157 = vmatpush1.bf16.msra.mxu0 %v2671_v34  ;;  %1200 = vmatpush1.bf16.msra.mxu1 %v2677_v56 }
 0x53b   :  { %1294 = vmatprep.subr.bf16.mxu0 %v2547_v21  ;;  %1337 = vmatprep.subr.bf16.mxu1 %v2553_v22  ;;  %v1557_v22 = vld [vmem:[%s2808_s0 + $0x168] sm:$0xff] }
 0x5dd   :  { %v1024_v3 = vpop.f32.mrf.mxu0  ;;  %v1067_v8 = vpop.f32.mrf.mxu1 }
 0x5de   :  { %v1076_v5 = vadd.f32 %v1552_v2, %v1024_v3  ;;  %v1078_v46 = vadd.f32 %v1554_v31, %v1067_v8 }
 0x5df   :  { %v1026_v53 = vpop.f32.mrf.mxu0  ;;  %v1069_v6 = vpop.f32.mrf.mxu1 }
 0x5e0   :  { %v1560_v10 = vmul.f32 -1.442695, %v1076_v5  ;;  %v1077_v21 = vadd.f32 %v1553_v4, %v1026_v53  ;;  %v1079_v44 = vadd.f32 %v1555_v29, %v1069_v6 }
 0x5e1   :  { %v1028_v0 = vpop.f32.mrf.mxu0  ;;  %v1071_v27 = vpop.f32.mrf.mxu1 }
 0x5e2   :  { %1818 = vpow2.f32 %v1560_v10  ;;  %v1562_v11 = vmul.f32 -1.442695, %v1077_v21  ;;  %v1080_v23 = vadd.f32 %v1556_v9, %v1028_v0  ;;  %v1564_v48 = vmul.f32 -1.442695, %v1079_v44 }
 0x5e3   :  { %v1030_v24 = vpop.f32.mrf.mxu0  ;;  %v1073_v43 = vpop.f32.mrf.mxu1  ;;  %v1082_v5 = vadd.f32 %v1558_v52, %v1071_v27 }
 0x5e4   :  { %1820 = vpow2.f32 %v1562_v11  ;;  %v1561_v25 = vmul.f32 -1.442695, %v1080_v23  ;;  %v1081_v26 = vadd.f32 %v1557_v22, %v1030_v24  ;;  %v1083_v35 = vadd.f32 %v1559_v33, %v1073_v43 }
 0x5e6   :  { %1822 = vpow2.f32 %v1561_v25  ;;  %v1563_v28 = vmul.f32 -1.442695, %v1081_v26  ;;  %v1565_v2 = vmul.f32 -1.442695, %v1083_v35 }
 0x5e8   :  { %1824 = vpow2.f32 %v1563_v28 }
 0x5e9   :  { %1826 = vtanh.f32 %v1078_v46 }
 0x5ef   :  { %v1819_v47 = vpop.eup %1818 }
 0x5f0   :  { %v1090_v49 = vadd.f32 1.0, %v1819_v47 }
 0x5f1   :  { %v1821_v54 = vpop.eup %1820 }
 0x5f2   :  { %1828 = vrcp.f32 %v1090_v49  ;;  %v1102_v3 = vadd.f32 1.0, %v1821_v54 }
 0x5f3   :  { %v1823_v4 = vpop.eup %1822  ;;  %1830 = vpow2.f32 %v1564_v48 }
 0x5f4   :  { %1832 = vrcp.f32 %v1102_v3  ;;  %v1091_v53 = vadd.f32 1.0, %v1823_v4 }
 0x5f5   :  { %v1825_v9 = vpop.eup %1824  ;;  %1834 = vpow2.f32 %v1565_v2 }
 0x5f6   :  { %1836 = vrcp.f32 %v1091_v53  ;;  %v1103_v8 = vadd.f32 1.0, %v1825_v9  ;;  %v1827_v10 = vpop.eup %1826 }
 0x5f7   :  { %1838 = vtanh.f32 %v1082_v5 }
 0x5f8   :  { %1840 = vrcp.f32 %v1103_v8 }
 0x5ff   :  { %v1829_v21 = vpop.eup %1828 }
 0x600   :  { %v1831_v0 = vpop.eup %1830  ;;  %v1124_v6 = vmul.f32 %v1829_v21, %v1827_v10 }
 0x601   :  { %v1833_v22 = vpop.eup %1832  ;;  %v1116_v25 = vadd.f32 1.0, %v1831_v0 }
 0x602   :  { %v1835_v11 = vpop.eup %1834  ;;  %v1122_v23 = vmul.f32 %v1833_v22, %v2581_v30 }
 0x603   :  { %v1837_v24 = vpop.eup %1836  ;;  %v1117_v29 = vadd.f32 1.0, %v1835_v11  ;;  %1842 = vrcp.f32 %v1116_v25 }
 0x604   :  { %v1839_v26 = vpop.eup %1838  ;;  %v2707_v27 = vadd.f32 %v1124_v6, %v1122_v23 }
 0x605   :  { %v1841_v28 = vpop.eup %1840  ;;  %v1125_v31 = vmul.f32 %v1839_v26, %v1837_v24 }
 0x606   :  { %v1123_v33 = vmul.f32 %v1841_v28, %v2584_v45  ;;  %1844 = vtanh.f32 %v2707_v27  ;;  %v1569_v45 = vld [vmem:[%s2808_s0 + $0x198] sm:$0xff] }
 0x607   :  { %1846 = vrcp.f32 %v1117_v29 }
 0x608   :  { %v2710_v43 = vadd.f32 %v1125_v31, %v1123_v33 }
 0x60a   :  { %1848 = vtanh.f32 %v2710_v43 }
 0x610   :  { %v1843_v44 = vpop.eup %1842 }
 0x613   :  { %v1845_v30 = vpop.eup %1844 }
 0x614   :  { %v1847_v46 = vpop.eup %1846  ;;  %v1130_v47 = vmul.f32 %v1845_v30, %v1843_v44 }
 0x617   :  { %v1849_v35 = vpop.eup %1848 }
 0x618   :  { %v1131_v48 = vmul.f32 %v1849_v35, %v1847_v46 }
 0x61a   :  { %v1132_v49 = vpack.c.bf16 %v1131_v48, %v1130_v47 }
 0x61c   :  { %1175 = vmatmul.mubr.bf16.vlgmr.msra.gmra.mxu0 %v1132_v49  ;;  %1218 = vmatmul.mubr.bf16.vlgmr.msra.gmra.mxu1 %v1132_v49  ;;  %v1581_v49 = vld [vmem:[%s2808_s0 + $0x1c8] sm:$0xff] }
 0x61d   :  { %1295 = vmatpush1.bf16.msra.mxu0 %v2425_v61  ;;  %1338 = vmatpush1.bf16.msra.mxu1 %v2431_v12  ;;  %v1567_v12 = vld [vmem:[%s2808_s0 + $0x188] sm:$0xff] }
 0x61e   :  { %1296 = vmatprep.subr.bf16.mxu0 %v2437_v13  ;;  %1339 = vmatprep.subr.bf16.mxu1 %v2443_v14 }
 0x61f   :  { %1326 = vmatprep.mubr.bf16.mxu0 %v1946_v1  ;;  %1369 = vmatprep.mubr.bf16.mxu1 %v1946_v1  ;;  %v1566_v1 = vld [vmem:[%s2808_s0 + $0x180] sm:$0xff] }
 0x621   :  { %1297 = vmatpush1.bf16.msra.mxu0 %v2451_v15  ;;  %1340 = vmatpush1.bf16.msra.mxu1 %v2457_v16  ;;  %v1570_v16 = vld [vmem:[%s2808_s0 + $0x1a0] sm:$0xff] }
 0x622   :  { %1298 = vmatprep.subr.bf16.mxu0 %v2463_v17  ;;  %1341 = vmatprep.subr.bf16.mxu1 %v2469_v18 }
 0x625   :  { %1299 = vmatpush1.bf16.msra.mxu0 %v2475_v19  ;;  %1342 = vmatpush1.bf16.msra.mxu1 %v2481_v20  ;;  %v1571_v20 = vld [vmem:[%s2808_s0 + $0x1a8] sm:$0xff] }
 0x626   :  { %1300 = vmatprep.subr.bf16.mxu0 %v2487_v59  ;;  %1343 = vmatprep.subr.bf16.mxu1 %v2493_v36 }
 0x629   :  { %1301 = vmatpush1.bf16.msra.mxu0 %v2499_v38  ;;  %1344 = vmatpush1.bf16.msra.mxu1 %v2505_v40 }
 0x62a   :  { %1302 = vmatprep.subr.bf16.mxu0 %v2511_v41  ;;  %1345 = vmatprep.subr.bf16.mxu1 %v2517_v37 }
 0x62d   :  { %1303 = vmatpush1.bf16.msra.mxu0 %v2523_v42  ;;  %1346 = vmatpush1.bf16.msra.mxu1 %v2610_v7  ;;  %v1568_v7 = vld [vmem:[%s2808_s0 + $0x190] sm:$0xff] }
 0x62e   :  { %1304 = vmatprep.subr.bf16.mxu0 %v2530_v39  ;;  %1347 = vmatprep.subr.bf16.mxu1 %v2617_v55  ;;  %v1573_v55 = vld [vmem:[%s2808_s0 + $0x1b8] sm:$0xff] }
 0x631   :  { %1305 = vmatpush1.bf16.msra.mxu0 %v2623_v57  ;;  %1348 = vmatpush1.bf16.msra.mxu1 %v2629_v58 }
 0x632   :  { %1306 = vmatprep.subr.bf16.mxu0 %v2635_v60  ;;  %1349 = vmatprep.subr.bf16.mxu1 %v2641_v51 }
 0x635   :  { %1307 = vmatpush1.bf16.msra.mxu0 %v2647_v62  ;;  %1350 = vmatpush1.bf16.msra.mxu1 %v2653_v50 }
 0x636   :  { %1308 = vmatprep.subr.bf16.mxu0 %v2659_v63  ;;  %1351 = vmatprep.subr.bf16.mxu1 %v2665_v32  ;;  %v1572_v32 = vld [vmem:[%s2808_s0 + $0x1b0] sm:$0xff] }
 0x639   :  { %1309 = vmatpush1.bf16.msra.mxu0 %v2671_v34  ;;  %1352 = vmatpush1.bf16.msra.mxu1 %v2677_v56 }
 0x6dc   :  { %v1176_v61 = vpop.f32.mrf.mxu0  ;;  %v1219_v14 = vpop.f32.mrf.mxu1 }
 0x6dd   :  { %v1228_v13 = vadd.f32 %v1566_v1, %v1176_v61  ;;  %v1230_v60 = vadd.f32 %v1568_v7, %v1219_v14 }
 0x6de   :  { %v1178_v15 = vpop.f32.mrf.mxu0  ;;  %v1221_v36 = vpop.f32.mrf.mxu1 }
 0x6df   :  { %v1574_v17 = vmul.f32 -1.442695, %v1228_v13  ;;  %v1229_v18 = vadd.f32 %v1567_v12, %v1178_v15  ;;  %v1231_v58 = vadd.f32 %v1569_v45, %v1221_v36  ;;  %v1584_v13 = vld [vmem:[%s2808_s0 + $0x1e0] sm:$0xff] }
 0x6e0   :  { %v1180_v19 = vpop.f32.mrf.mxu0  ;;  %v1223_v42 = vpop.f32.mrf.mxu1 }
 0x6e1   :  { %1850 = vpow2.f32 %v1574_v17  ;;  %v1576_v59 = vmul.f32 -1.442695, %v1229_v18  ;;  %v1232_v38 = vadd.f32 %v1570_v16, %v1180_v19  ;;  %v1578_v50 = vmul.f32 -1.442695, %v1231_v58  ;;  %v1585_v17 = vld [vmem:[%s2808_s0 + $0x1e8] sm:$0xff] }
 0x6e2   :  { %v1182_v40 = vpop.f32.mrf.mxu0  ;;  %v1225_v57 = vpop.f32.mrf.mxu1  ;;  %v1234_v2 = vadd.f32 %v1572_v32, %v1223_v42  ;;  %v1582_v42 = vld [vmem:[%s2808_s0 + $0x1d0] sm:$0xff] }
 0x6e3   :  { %1852 = vpow2.f32 %v1576_v59  ;;  %v1575_v41 = vmul.f32 -1.442695, %v1232_v38  ;;  %v1233_v37 = vadd.f32 %v1571_v20, %v1182_v40  ;;  %v1235_v51 = vadd.f32 %v1573_v55, %v1225_v57 }
 0x6e5   :  { %1854 = vpow2.f32 %v1575_v41  ;;  %v1577_v39 = vmul.f32 -1.442695, %v1233_v37  ;;  %v1579_v56 = vmul.f32 -1.442695, %v1235_v51  ;;  %v1583_v37 = vld [vmem:[%s2808_s0 + $0x1d8] sm:$0xff] }
 0x6e7   :  { %1856 = vpow2.f32 %v1577_v39  ;;  %v1587_v39 = vld [vmem:[%s2808_s0 + $0x1f8] sm:$0xff] }
 0x6e8   :  { %1858 = vtanh.f32 %v1230_v60 }
 0x6ee   :  { %v1851_v62 = vpop.eup %1850 }
 0x6ef   :  { %v1242_v63 = vadd.f32 1.0, %v1851_v62  ;;  %v1586_v62 = vld [vmem:[%s2808_s0 + $0x1f0] sm:$0xff] }
 0x6f0   :  { %v1853_v34 = vpop.eup %1852 }
 0x6f1   :  { %1860 = vrcp.f32 %v1242_v63  ;;  %v1254_v52 = vadd.f32 1.0, %v1853_v34 }
 0x6f2   :  { %v1855_v54 = vpop.eup %1854  ;;  %1862 = vpow2.f32 %v1578_v50 }
 0x6f3   :  { %1864 = vrcp.f32 %v1254_v52  ;;  %v1243_v3 = vadd.f32 1.0, %v1855_v54 }
 0x6f4   :  { %v1857_v4 = vpop.eup %1856  ;;  %1866 = vpow2.f32 %v1579_v56 }
 0x6f5   :  { %1868 = vrcp.f32 %v1243_v3  ;;  %v1255_v5 = vadd.f32 1.0, %v1857_v4  ;;  %v1859_v53 = vpop.eup %1858 }
 0x6f6   :  { %1870 = vtanh.f32 %v1234_v2 }
 0x6f7   :  { %1872 = vrcp.f32 %v1255_v5 }
 0x6fe   :  { %v1861_v9 = vpop.eup %1860 }
 0x6ff   :  { %v1863_v8 = vpop.eup %1862  ;;  %v1276_v0 = vmul.f32 %v1861_v9, %v1859_v53 }
 0x700   :  { %v1865_v10 = vpop.eup %1864  ;;  %v1268_v6 = vadd.f32 1.0, %v1863_v8 }
 0x701   :  { %v1867_v21 = vpop.eup %1866  ;;  %v1274_v22 = vmul.f32 %v1865_v10, %v2707_v27 }
 0x702   :  { %v1869_v11 = vpop.eup %1868  ;;  %v1269_v26 = vadd.f32 1.0, %v1867_v21  ;;  %1874 = vrcp.f32 %v1268_v6 }
 0x703   :  { %v1871_v23 = vpop.eup %1870  ;;  %v2771_v24 = vadd.f32 %v1276_v0, %v1274_v22 }
 0x704   :  { %v1873_v25 = vpop.eup %1872  ;;  %v1277_v28 = vmul.f32 %v1871_v23, %v1869_v11 }
 0x705   :  { %v1275_v29 = vmul.f32 %v1873_v25, %v2710_v43  ;;  %1876 = vtanh.f32 %v2771_v24  ;;  %v1580_v43 = vld [vmem:[%s2808_s0 + $0x1c0] sm:$0xff] }
 0x706   :  { %1878 = vrcp.f32 %v1269_v26 }
 0x707   :  { %v2774_v31 = vadd.f32 %v1277_v28, %v1275_v29 }
 0x709   :  { %1880 = vtanh.f32 %v2774_v31 }
 0x70f   :  { %v1875_v33 = vpop.eup %1874 }
 0x712   :  { %v1877_v27 = vpop.eup %1876 }
 0x713   :  { %v1879_v44 = vpop.eup %1878  ;;  %v1282_v46 = vmul.f32 %v1877_v27, %v1875_v33 }
 0x716   :  { %v1881_v30 = vpop.eup %1880 }
 0x717   :  { %v1283_v35 = vmul.f32 %v1881_v30, %v1879_v44 }
 0x719   :  { %v1284_v47 = vpack.c.bf16 %v1283_v35, %v1282_v46 }
 0x71b   :  { %1327 = vmatmul.mubr.bf16.vlgmr.msra.gmra.mxu0 %v1284_v47  ;;  %1370 = vmatmul.mubr.bf16.vlgmr.msra.gmra.mxu1 %v1284_v47 }
 0x7db   :  { %v1328_v48 = vpop.f32.mrf.mxu0  ;;  %v1371_v61 = vpop.f32.mrf.mxu1 }
 0x7dc   :  { %v1380_v1 = vadd.f32 %v1580_v43, %v1328_v48  ;;  %v1382_v55 = vadd.f32 %v1582_v42, %v1371_v61 }
 0x7dd   :  { %v1330_v12 = vpop.f32.mrf.mxu0  ;;  %v1373_v19 = vpop.f32.mrf.mxu1 }
 0x7de   :  { %v1588_v14 = vmul.f32 -1.442695, %v1380_v1  ;;  %v1381_v15 = vadd.f32 %v1581_v49, %v1330_v12  ;;  %v1383_v7 = vadd.f32 %v1583_v37, %v1373_v19 }
 0x7df   :  { %v1332_v16 = vpop.f32.mrf.mxu0  ;;  %v1375_v40 = vpop.f32.mrf.mxu1 }
 0x7e0   :  { %1882 = vpow2.f32 %v1588_v14  ;;  %v1590_v18 = vmul.f32 -1.442695, %v1381_v15  ;;  %v1384_v20 = vadd.f32 %v1584_v13, %v1332_v16  ;;  %v1592_v60 = vmul.f32 -1.442695, %v1383_v7 }
 0x7e1   :  { %v1334_v59 = vpop.f32.mrf.mxu0  ;;  %v1377_v45 = vpop.f32.mrf.mxu1  ;;  %v1386_v56 = vadd.f32 %v1586_v62, %v1375_v40 }
 0x7e2   :  { %1884 = vpow2.f32 %v1590_v18  ;;  %v1589_v36 = vmul.f32 -1.442695, %v1384_v20  ;;  %v1385_v38 = vadd.f32 %v1585_v17, %v1334_v59  ;;  %v1387_v57 = vadd.f32 %v1587_v39, %v1377_v45 }
 0x7e4   :  { %1886 = vpow2.f32 %v1589_v36  ;;  %v1591_v41 = vmul.f32 -1.442695, %v1385_v38  ;;  %v1593_v63 = vmul.f32 -1.442695, %v1387_v57 }
 0x7e6   :  { %1888 = vpow2.f32 %v1591_v41 }
 0x7e7   :  { %1890 = vtanh.f32 %v1382_v55 }
 0x7ed   :  { %v1883_v58 = vpop.eup %1882 }
 0x7ee   :  { %v1394_v51 = vadd.f32 1.0, %v1883_v58 }
 0x7ef   :  { %v1885_v50 = vpop.eup %1884 }
 0x7f0   :  { %1892 = vrcp.f32 %v1394_v51  ;;  %v1406_v32 = vadd.f32 1.0, %v1885_v50 }
 0x7f1   :  { %v1887_v34 = vpop.eup %1886  ;;  %1894 = vpow2.f32 %v1592_v60 }
 0x7f2   :  { %1896 = vrcp.f32 %v1406_v32  ;;  %v1395_v52 = vadd.f32 1.0, %v1887_v34 }
 0x7f3   :  { %v1889_v54 = vpop.eup %1888  ;;  %1898 = vpow2.f32 %v1593_v63 }
 0x7f4   :  { %1900 = vrcp.f32 %v1395_v52  ;;  %v1407_v2 = vadd.f32 1.0, %v1889_v54  ;;  %v1891_v3 = vpop.eup %1890 }
 0x7f5   :  { %1902 = vtanh.f32 %v1386_v56 }
 0x7f6   :  { %1904 = vrcp.f32 %v1407_v2 }
 0x7fd   :  { %v1893_v4 = vpop.eup %1892 }
 0x7fe   :  { %v1895_v5 = vpop.eup %1894  ;;  %v1428_v8 = vmul.f32 %v1893_v4, %v1891_v3 }
 0x7ff   :  { %v1897_v53 = vpop.eup %1896  ;;  %v1420_v0 = vadd.f32 1.0, %v1895_v5 }
 0x800   :  { %v1899_v9 = vpop.eup %1898  ;;  %v1426_v10 = vmul.f32 %v1897_v53, %v2771_v24 }
 0x801   :  { %v1901_v21 = vpop.eup %1900  ;;  %v1421_v23 = vadd.f32 1.0, %v1899_v9  ;;  %1906 = vrcp.f32 %v1420_v0 }
 0x802   :  { %v1903_v22 = vpop.eup %1902  ;;  %v1430_v11 = vadd.f32 %v1428_v8, %v1426_v10 }
 0x803   :  { %v1905_v6 = vpop.eup %1904  ;;  %v1429_v25 = vmul.f32 %v1903_v22, %v1901_v21 }
 0x804   :  { %v1427_v26 = vmul.f32 %v1905_v6, %v2774_v31  ;;  %1908 = vtanh.f32 %v1430_v11 }
 0x805   :  { %1910 = vrcp.f32 %v1421_v23 }
 0x806   :  { %v1431_v28 = vadd.f32 %v1429_v25, %v1427_v26 }
 0x808   :  { %1912 = vtanh.f32 %v1431_v28 }
 0x80e   :  { %v1907_v29 = vpop.eup %1906 }
 0x811   :  { %v1909_v33 = vpop.eup %1908 }
 0x812   :  { %v1911_v27 = vpop.eup %1910  ;;  %v1434_v30 = vmul.f32 %v1909_v33, %v1907_v29 }
 0x815   :  { %v1913_v44 = vpop.eup %1912 }
 0x816   :  { %v1435_v24 = vmul.f32 %v1913_v44, %v1911_v27 }
 0x818   :  { %v1601_v46 = vpack.c.bf16 %v1435_v24, %v1434_v30 }
 0x81a   :  { %1602 = vst [vmem:[#allocation2] sm:$0xff] %v1601_v46   ;;  %1607 = vst [vmem:[%s2809_s2] sm:$0xff] %v1601_v46  }

</bundles_post_ra>
